<compile_context>
chip_gen: v5e
topology: v5e:2x2
jax: 0.10.0
libtpu: 0.0.40
codegen_flags: <defaults>
</compile_context>

<pallas_src>
import math

import jax
import jax.numpy as jnp
from jax.experimental import pallas as pl
from jax.experimental.pallas import tpu as pltpu

# ---- model hyperparameters (small, consistent with the module) -------------
B = 2            # batch
S = 16           # sequence length ("hw")
E = 32           # embedding_dim
H = 4            # num_heads
DH = E // H      # head dim
MLP = 64         # mlp_dim
BS = B * S       # flattened rows
LN_EPS = 1e-5


def encoder_layer_kernel(
    x_ref, pos_ref,          # (S, E) f32       -- one batch per grid step
    wqk_ref,                 # (E, 2E) bf16     -- [Wq*scale | Wk]
    bqk_ref,                 # (1, 2E) f32      -- [bq*scale | bk]
    wv_ref,                  # (E, E) bf16
    wo_ref,                  # (H, DH, E) bf16  -- head-split out-projection
    w1_ref,                  # (E, MLP) bf16
    w2_ref,                  # (MLP, E) bf16
    b1_ref,                  # (1, MLP) f32
    vec_ref,                 # (7, E) f32 rows: bv, bo, b2, g1, be1, g2, be2
    out_ref,                 # (S, E) f32
):
    f32 = jnp.float32
    bf16 = jnp.bfloat16
    vec = vec_ref[...]                              # (7, E) hoisted once

    x = x_ref[...]                                  # (S, E) f32
    qk_in = (x + pos_ref[...]).astype(bf16)         # q = k input: image + pos
    v_in = x.astype(bf16)                           # v input: image embeddings

    # ---- lane-dense fused projections ---------------------------------------
    qk = jnp.dot(qk_in, wqk_ref[...],
                 preferred_element_type=f32) + bqk_ref[...]        # (S, 2E)
    v = jnp.dot(v_in, wv_ref[...],
                preferred_element_type=f32) + vec[0:1, :]          # (S, E)

    # One head-split relayout per tensor: (S, E) -> (H, S, DH)
    def split_heads(t):
        return t.reshape(S, H, DH).transpose(1, 0, 2).astype(bf16)

    q_h = split_heads(qk[:, :E])
    k_h = split_heads(qk[:, E:])
    v_h = split_heads(v)

    # ---- scaled-dot-product attention, all heads at once (scale folded into Wq)
    s = jnp.einsum("hqd,hkd->hqk", q_h, k_h,
                   preferred_element_type=f32)                     # (H, S, S)
    m = jnp.max(s, axis=-1, keepdims=True)
    p = jnp.exp(s - m)
    inv_denom = pl.reciprocal(jnp.sum(p, axis=-1, keepdims=True), approx=True)
    o = jnp.einsum("hqk,hkd->hqd", p.astype(bf16), v_h,
                   preferred_element_type=f32) * inv_denom         # (H, S, DH)

    # ---- out projection fused with head merge: lane-dense (S, E) result ----
    attn_out = jnp.einsum("hqd,hde->hqe", o.astype(bf16), wo_ref[...],
                          preferred_element_type=f32).sum(axis=0) + vec[1:2, :]

    # ---- residual + LayerNorm 1 (dropout1 = identity), one-pass variance ----
    h1 = x + attn_out
    mu1 = jnp.mean(h1, axis=-1, keepdims=True)
    var1 = jnp.mean(h1 * h1, axis=-1, keepdims=True) - mu1 * mu1
    h1 = (h1 - mu1) * jax.lax.rsqrt(var1 + LN_EPS) * vec[3:4, :] + vec[4:5, :]

    # ---- MLP: linear1 -> ReLU -> linear2 (inner dropout = identity) --------
    m1 = jnp.dot(h1.astype(bf16), w1_ref[...],
                 preferred_element_type=f32) + b1_ref[...]
    m1 = jnp.maximum(m1, 0.0)
    mlp_out = jnp.dot(m1.astype(bf16), w2_ref[...],
                      preferred_element_type=f32) + vec[2:3, :]

    # ---- residual + LayerNorm 2 (dropout2 = identity), one-pass variance ----
    h2 = h1 + mlp_out
    mu2 = jnp.mean(h2, axis=-1, keepdims=True)
    var2 = jnp.mean(h2 * h2, axis=-1, keepdims=True) - mu2 * mu2
    out = (h2 - mu2) * jax.lax.rsqrt(var2 + LN_EPS) * vec[5:6, :] + vec[6:7, :]

    out_ref[...] = out.astype(out_ref.dtype)


def transformer_encoder_layer(x, pos, kparams):
    """x, pos: (B, S, E) float32. kparams: dict from pack_params()."""
    x_flat = x.reshape(BS, E)
    pos_flat = pos.reshape(BS, E)
    weights = (kparams["wqk"], kparams["bqk"], kparams["wv"], kparams["wo"],
               kparams["w1"], kparams["w2"], kparams["b1"], kparams["vec"])

    def whole(a):                              # weights: full-array block, constant
        nd = a.ndim
        return pl.BlockSpec(a.shape, lambda b, _nd=nd: (0,) * _nd)

    row_spec = pl.BlockSpec((S, E), lambda b: (b, 0))   # rows b*S:(b+1)*S

    out = pl.pallas_call(
        encoder_layer_kernel,
        out_shape=jax.ShapeDtypeStruct((BS, E), jnp.float32),
        grid_spec=pltpu.PrefetchScalarGridSpec(
            num_scalar_prefetch=0,
            grid=(B,),
            in_specs=[row_spec, row_spec] + [whole(a) for a in weights],
            out_specs=pl.BlockSpec((S, E), lambda b: (b, 0)),
        ),
        compiler_params=pltpu.CompilerParams(
            dimension_semantics=("parallel",),
        ),
    )(x_flat, pos_flat, *weights)
    return out.reshape(B, S, E)


def make_params(key):
    """Canonical parameters in x @ W layout (matches PyTorch semantics)."""
    ks = jax.random.split(key, 12)
    sc = 0.02
    return {
        "wq": sc * jax.random.normal(ks[0], (E, E), jnp.float32),
        "wk": sc * jax.random.normal(ks[1], (E, E), jnp.float32),
        "wv": sc * jax.random.normal(ks[2], (E, E), jnp.float32),
        "wo": sc * jax.random.normal(ks[3], (E, E), jnp.float32),
        "w1": sc * jax.random.normal(ks[4], (E, MLP), jnp.float32),
        "w2": sc * jax.random.normal(ks[5], (MLP, E), jnp.float32),
        "bq": sc * jax.random.normal(ks[6], (E,), jnp.float32),
        "bk": sc * jax.random.normal(ks[7], (E,), jnp.float32),
        "bv": sc * jax.random.normal(ks[8], (E,), jnp.float32),
        "bo": sc * jax.random.normal(ks[9], (E,), jnp.float32),
        "b1": sc * jax.random.normal(ks[10], (MLP,), jnp.float32),
        "b2": sc * jax.random.normal(ks[11], (E,), jnp.float32),
        "g1": jnp.ones((E,), jnp.float32), "be1": jnp.zeros((E,), jnp.float32),
        "g2": jnp.ones((E,), jnp.float32), "be2": jnp.zeros((E,), jnp.float32),
    }


def pack_params(p):
    """Offline packing: fused lane-dense QK weights, folded softmax scale,
    head-split out-projection, bf16 matmul weights, stacked bias/gain vectors."""
    scale = 1.0 / math.sqrt(DH)
    wqk = jnp.concatenate([p["wq"] * scale, p["wk"]], axis=1).astype(jnp.bfloat16)  # (E, 2E)
    bqk = jnp.concatenate([p["bq"] * scale, p["bk"]]).reshape(1, 2 * E).astype(jnp.float32)
    wo_h = p["wo"].reshape(H, DH, E).astype(jnp.bfloat16)                            # (H, DH, E)
    vec = jnp.stack([p["bv"], p["bo"], p["b2"], p["g1"],
                     p["be1"], p["g2"], p["be2"]]).astype(jnp.float32)               # (7, E)
    return {
        "wqk": wqk, "bqk": bqk,
        "wv": p["wv"].astype(jnp.bfloat16),
        "wo": wo_h,
        "w1": p["w1"].astype(jnp.bfloat16),
        "w2": p["w2"].astype(jnp.bfloat16),
        "b1": p["b1"].reshape(1, MLP).astype(jnp.float32),
        "vec": vec,
    }


def reference(x, pos, p):
    """Pure-JAX f32 reference matching the PyTorch module (eval mode)."""
    qk = x + pos
    q = qk @ p["wq"] + p["bq"]
    k = qk @ p["wk"] + p["bk"]
    v = x @ p["wv"] + p["bv"]
    qh = q.reshape(B, S, H, DH)
    kh = k.reshape(B, S, H, DH)
    vh = v.reshape(B, S, H, DH)
    scores = jnp.einsum("bqhd,bkhd->bhqk", qh, kh) / math.sqrt(DH)
    pattn = jax.nn.softmax(scores, axis=-1)
    attn = jnp.einsum("bhqk,bkhd->bqhd", pattn, vh).reshape(B, S, E)
    attn = attn @ p["wo"] + p["bo"]

    def ln(h, g, b):
        mu = h.mean(-1, keepdims=True)
        var = ((h - mu) ** 2).mean(-1, keepdims=True)
        return (h - mu) * jax.lax.rsqrt(var + LN_EPS) * g + b

    h1 = ln(x + attn, p["g1"], p["be1"])
    mlp = jnp.maximum(h1 @ p["w1"] + p["b1"], 0.0) @ p["w2"] + p["b2"]
    return ln(h1 + mlp, p["g2"], p["be2"])


if __name__ == "__main__":
    key = jax.random.PRNGKey(0)
    kx, kp, kw = jax.random.split(key, 3)
    x = jax.random.normal(kx, (B, S, E), jnp.float32)
    pos = jax.random.normal(kp, (B, S, E), jnp.float32)
    params = make_params(kw)
    kparams = pack_params(params)

    out = transformer_encoder_layer(x, pos, kparams)
    out = jax.block_until_ready(out)

    ref = reference(x, pos, params)
    assert out.shape == (B, S, E)
    max_err = jnp.max(jnp.abs(out - ref))
    # bf16 matmul operands + approx reciprocal -> allow a few e-3 of deviation.
    assert jnp.allclose(out, ref, atol=2e-2, rtol=2e-2), \
        f"mismatch vs reference (max abs err {max_err})"

    print("KERNEL_OK")
</pallas_src>

<mosaic_0001>
module attributes {stable_mosaic.version = 11 : i64} {
  func.func @encoder_layer_kernel(%arg0: i32, %arg1: memref<16x32xf32, #tpu.memory_space<vmem>>, %arg2: memref<16x32xf32, #tpu.memory_space<vmem>>, %arg3: memref<32x64xbf16, #tpu.memory_space<vmem>>, %arg4: memref<1x64xf32, #tpu.memory_space<vmem>>, %arg5: memref<32x32xbf16, #tpu.memory_space<vmem>>, %arg6: memref<4x8x32xbf16, #tpu.memory_space<vmem>>, %arg7: memref<32x64xbf16, #tpu.memory_space<vmem>>, %arg8: memref<64x32xbf16, #tpu.memory_space<vmem>>, %arg9: memref<1x64xf32, #tpu.memory_space<vmem>>, %arg10: memref<7x32xf32, #tpu.memory_space<vmem>>, %arg11: memref<16x32xf32, #tpu.memory_space<vmem>>) attributes {dimension_semantics = [#tpu.dimension_semantics<parallel>], iteration_bounds = array<i64: 2>, scalar_prefetch = 0 : i64, scratch_operands = 0 : i64, tpu.core_type = #tpu.core_type<tc>, window_params = [{transform_indices = @transform_0, window_bounds = array<i64: 16, 32>}, {transform_indices = @transform_1, window_bounds = array<i64: 16, 32>}, {pipeline_mode = #tpu.pipeline_mode<synchronous>, transform_indices = @transform_2, window_bounds = array<i64: 32, 64>}, {pipeline_mode = #tpu.pipeline_mode<synchronous>, transform_indices = @transform_3, window_bounds = array<i64: 1, 64>}, {pipeline_mode = #tpu.pipeline_mode<synchronous>, transform_indices = @transform_4, window_bounds = array<i64: 32, 32>}, {pipeline_mode = #tpu.pipeline_mode<synchronous>, transform_indices = @transform_5, window_bounds = array<i64: 4, 8, 32>}, {pipeline_mode = #tpu.pipeline_mode<synchronous>, transform_indices = @transform_6, window_bounds = array<i64: 32, 64>}, {pipeline_mode = #tpu.pipeline_mode<synchronous>, transform_indices = @transform_7, window_bounds = array<i64: 64, 32>}, {pipeline_mode = #tpu.pipeline_mode<synchronous>, transform_indices = @transform_8, window_bounds = array<i64: 1, 64>}, {pipeline_mode = #tpu.pipeline_mode<synchronous>, transform_indices = @transform_9, window_bounds = array<i64: 7, 32>}, {transform_indices = @transform_10, window_bounds = array<i64: 16, 32>}]} {
    %c0 = arith.constant 0 : index
    %c0_0 = arith.constant 0 : index
    %0 = vector.load %arg10[%c0, %c0_0] : memref<7x32xf32, #tpu.memory_space<vmem>>, vector<7x32xf32>
    %c0_1 = arith.constant 0 : index
    %c0_2 = arith.constant 0 : index
    %1 = vector.load %arg1[%c0_1, %c0_2] : memref<16x32xf32, #tpu.memory_space<vmem>>, vector<16x32xf32>
    %c0_3 = arith.constant 0 : index
    %c0_4 = arith.constant 0 : index
    %2 = vector.load %arg2[%c0_3, %c0_4] : memref<16x32xf32, #tpu.memory_space<vmem>>, vector<16x32xf32>
    %3 = arith.addf %1, %2 : vector<16x32xf32>
    %4 = arith.truncf %3 : vector<16x32xf32> to vector<16x32xbf16>
    %5 = arith.truncf %1 : vector<16x32xf32> to vector<16x32xbf16>
    %c0_5 = arith.constant 0 : index
    %c0_6 = arith.constant 0 : index
    %6 = vector.load %arg3[%c0_5, %c0_6] : memref<32x64xbf16, #tpu.memory_space<vmem>>, vector<32x64xbf16>
    %cst = arith.constant dense<0.000000e+00> : vector<16x64xf32>
    %7 = tpu.matmul %4, %6, %cst {dimension_numbers = #tpu.dot_dimension_numbers<[1], [0], [0], [1], [0, 0, 1, 1], [], []>} : vector<16x32xbf16>, vector<32x64xbf16>, vector<16x64xf32> -> vector<16x64xf32>
    %c0_7 = arith.constant 0 : index
    %c0_8 = arith.constant 0 : index
    %8 = vector.load %arg4[%c0_7, %c0_8] : memref<1x64xf32, #tpu.memory_space<vmem>>, vector<1x64xf32>
    %9 = vector.broadcast %8 : vector<1x64xf32> to vector<16x64xf32>
    %10 = arith.addf %7, %9 : vector<16x64xf32>
    %c0_9 = arith.constant 0 : index
    %c0_10 = arith.constant 0 : index
    %11 = vector.load %arg5[%c0_9, %c0_10] : memref<32x32xbf16, #tpu.memory_space<vmem>>, vector<32x32xbf16>
    %cst_11 = arith.constant dense<0.000000e+00> : vector<16x32xf32>
    %12 = tpu.matmul %5, %11, %cst_11 {dimension_numbers = #tpu.dot_dimension_numbers<[1], [0], [0], [1], [0, 0, 1, 1], [], []>} : vector<16x32xbf16>, vector<32x32xbf16>, vector<16x32xf32> -> vector<16x32xf32>
    %13 = vector.extract_strided_slice %0 {offsets = [0, 0], sizes = [1, 32], strides = [1, 1]} : vector<7x32xf32> to vector<1x32xf32>
    %14 = vector.broadcast %13 : vector<1x32xf32> to vector<16x32xf32>
    %15 = arith.addf %12, %14 : vector<16x32xf32>
    %16 = vector.extract_strided_slice %10 {offsets = [0, 0], sizes = [16, 32], strides = [1, 1]} : vector<16x64xf32> to vector<16x32xf32>
    %17 = vector.shape_cast %16 : vector<16x32xf32> to vector<16x4x8xf32>
    %18 = tpu.transpose %17, [1, 0, 2] : vector<16x4x8xf32> -> vector<4x16x8xf32>
    %19 = arith.truncf %18 : vector<4x16x8xf32> to vector<4x16x8xbf16>
    %20 = vector.extract_strided_slice %10 {offsets = [0, 32], sizes = [16, 32], strides = [1, 1]} : vector<16x64xf32> to vector<16x32xf32>
    %21 = vector.shape_cast %20 : vector<16x32xf32> to vector<16x4x8xf32>
    %22 = tpu.transpose %21, [1, 0, 2] : vector<16x4x8xf32> -> vector<4x16x8xf32>
    %23 = arith.truncf %22 : vector<4x16x8xf32> to vector<4x16x8xbf16>
    %24 = vector.shape_cast %15 : vector<16x32xf32> to vector<16x4x8xf32>
    %25 = tpu.transpose %24, [1, 0, 2] : vector<16x4x8xf32> -> vector<4x16x8xf32>
    %26 = arith.truncf %25 : vector<4x16x8xf32> to vector<4x16x8xbf16>
    "tpu.trace_start"() <{level = 10 : i32, message = "hqd,hkd->hqk"}> : () -> ()
    %cst_12 = arith.constant dense<0.000000e+00> : vector<4x16x16xf32>
    %27 = tpu.matmul %19, %23, %cst_12 {dimension_numbers = #tpu.dot_dimension_numbers<[2], [2], [1], [1], [0, 0, 0, 1, 1, 1], [0], [0]>} : vector<4x16x8xbf16>, vector<4x16x8xbf16>, vector<4x16x16xf32> -> vector<4x16x16xf32>
    "tpu.trace_stop"() : () -> ()
    %cst_13 = arith.constant dense<0xFF800000> : vector<4x16xf32>
    %28 = vector.multi_reduction <maximumf>, %27, %cst_13 [2] : vector<4x16x16xf32> to vector<4x16xf32>
    %29 = vector.shape_cast %28 : vector<4x16xf32> to vector<4x16x1xf32>
    %30 = vector.broadcast %29 : vector<4x16x1xf32> to vector<4x16x16xf32>
    %31 = arith.subf %27, %30 : vector<4x16x16xf32>
    %32 = math.exp %31 : vector<4x16x16xf32>
    %cst_14 = arith.constant dense<0.000000e+00> : vector<4x16xf32>
    %33 = vector.multi_reduction <add>, %32, %cst_14 [2] : vector<4x16x16xf32> to vector<4x16xf32>
    %34 = vector.shape_cast %33 : vector<4x16xf32> to vector<4x16x1xf32>
    %35 = tpu.reciprocal %34 {approx = true} : vector<4x16x1xf32> -> vector<4x16x1xf32>
    %36 = arith.truncf %32 : vector<4x16x16xf32> to vector<4x16x16xbf16>
    "tpu.trace_start"() <{level = 10 : i32, message = "hqk,hkd->hqd"}> : () -> ()
    %cst_15 = arith.constant dense<0.000000e+00> : vector<4x16x8xf32>
    %37 = tpu.matmul %36, %26, %cst_15 {dimension_numbers = #tpu.dot_dimension_numbers<[2], [1], [1], [2], [0, 0, 0, 1, 1, 2], [0], [0]>} : vector<4x16x16xbf16>, vector<4x16x8xbf16>, vector<4x16x8xf32> -> vector<4x16x8xf32>
    "tpu.trace_stop"() : () -> ()
    %38 = vector.broadcast %35 : vector<4x16x1xf32> to vector<4x16x8xf32>
    %39 = arith.mulf %37, %38 : vector<4x16x8xf32>
    %40 = arith.truncf %39 : vector<4x16x8xf32> to vector<4x16x8xbf16>
    %c0_16 = arith.constant 0 : index
    %c0_17 = arith.constant 0 : index
    %c0_18 = arith.constant 0 : index
    %41 = vector.load %arg6[%c0_16, %c0_17, %c0_18] : memref<4x8x32xbf16, #tpu.memory_space<vmem>>, vector<4x8x32xbf16>
    "tpu.trace_start"() <{level = 10 : i32, message = "hqd,hde->hqe"}> : () -> ()
    %cst_19 = arith.constant dense<0.000000e+00> : vector<4x16x32xf32>
    %42 = tpu.matmul %40, %41, %cst_19 {dimension_numbers = #tpu.dot_dimension_numbers<[2], [1], [1], [2], [0, 0, 0, 1, 1, 2], [0], [0]>} : vector<4x16x8xbf16>, vector<4x8x32xbf16>, vector<4x16x32xf32> -> vector<4x16x32xf32>
    "tpu.trace_stop"() : () -> ()
    %cst_20 = arith.constant dense<0.000000e+00> : vector<16x32xf32>
    %43 = vector.multi_reduction <add>, %42, %cst_20 [0] : vector<4x16x32xf32> to vector<16x32xf32>
    %44 = vector.extract_strided_slice %0 {offsets = [1, 0], sizes = [1, 32], strides = [1, 1]} : vector<7x32xf32> to vector<1x32xf32>
    %45 = vector.broadcast %44 : vector<1x32xf32> to vector<16x32xf32>
    %46 = arith.addf %43, %45 : vector<16x32xf32>
    %47 = arith.addf %1, %46 : vector<16x32xf32>
    %cst_21 = arith.constant dense<0.000000e+00> : vector<16xf32>
    %48 = vector.multi_reduction <add>, %47, %cst_21 [1] : vector<16x32xf32> to vector<16xf32>
    %49 = vector.shape_cast %48 : vector<16xf32> to vector<16x1xf32>
    %cst_22 = arith.constant 3.200000e+01 : f32
    %50 = vector.broadcast %cst_22 : f32 to vector<16x1xf32>
    %51 = arith.divf %49, %50 : vector<16x1xf32>
    %52 = arith.mulf %47, %47 : vector<16x32xf32>
    %cst_23 = arith.constant dense<0.000000e+00> : vector<16xf32>
    %53 = vector.multi_reduction <add>, %52, %cst_23 [1] : vector<16x32xf32> to vector<16xf32>
    %54 = vector.shape_cast %53 : vector<16xf32> to vector<16x1xf32>
    %cst_24 = arith.constant 3.200000e+01 : f32
    %55 = vector.broadcast %cst_24 : f32 to vector<16x1xf32>
    %56 = arith.divf %54, %55 : vector<16x1xf32>
    %57 = arith.mulf %51, %51 : vector<16x1xf32>
    %58 = arith.subf %56, %57 : vector<16x1xf32>
    %59 = vector.broadcast %51 : vector<16x1xf32> to vector<16x32xf32>
    %60 = arith.subf %47, %59 : vector<16x32xf32>
    %cst_25 = arith.constant 9.99999974E-6 : f32
    %61 = vector.broadcast %cst_25 : f32 to vector<16x1xf32>
    %62 = arith.addf %58, %61 : vector<16x1xf32>
    %63 = math.rsqrt %62 : vector<16x1xf32>
    %64 = vector.broadcast %63 : vector<16x1xf32> to vector<16x32xf32>
    %65 = arith.mulf %60, %64 : vector<16x32xf32>
    %66 = vector.extract_strided_slice %0 {offsets = [3, 0], sizes = [1, 32], strides = [1, 1]} : vector<7x32xf32> to vector<1x32xf32>
    %67 = vector.broadcast %66 : vector<1x32xf32> to vector<16x32xf32>
    %68 = arith.mulf %65, %67 : vector<16x32xf32>
    %69 = vector.extract_strided_slice %0 {offsets = [4, 0], sizes = [1, 32], strides = [1, 1]} : vector<7x32xf32> to vector<1x32xf32>
    %70 = vector.broadcast %69 : vector<1x32xf32> to vector<16x32xf32>
    %71 = arith.addf %68, %70 : vector<16x32xf32>
    %72 = arith.truncf %71 : vector<16x32xf32> to vector<16x32xbf16>
    %c0_26 = arith.constant 0 : index
    %c0_27 = arith.constant 0 : index
    %73 = vector.load %arg7[%c0_26, %c0_27] : memref<32x64xbf16, #tpu.memory_space<vmem>>, vector<32x64xbf16>
    %cst_28 = arith.constant dense<0.000000e+00> : vector<16x64xf32>
    %74 = tpu.matmul %72, %73, %cst_28 {dimension_numbers = #tpu.dot_dimension_numbers<[1], [0], [0], [1], [0, 0, 1, 1], [], []>} : vector<16x32xbf16>, vector<32x64xbf16>, vector<16x64xf32> -> vector<16x64xf32>
    %c0_29 = arith.constant 0 : index
    %c0_30 = arith.constant 0 : index
    %75 = vector.load %arg9[%c0_29, %c0_30] : memref<1x64xf32, #tpu.memory_space<vmem>>, vector<1x64xf32>
    %76 = vector.broadcast %75 : vector<1x64xf32> to vector<16x64xf32>
    %77 = arith.addf %74, %76 : vector<16x64xf32>
    %cst_31 = arith.constant 0.000000e+00 : f32
    %78 = vector.broadcast %cst_31 : f32 to vector<16x64xf32>
    %79 = arith.maximumf %77, %78 : vector<16x64xf32>
    %80 = arith.truncf %79 : vector<16x64xf32> to vector<16x64xbf16>
    %c0_32 = arith.constant 0 : index
    %c0_33 = arith.constant 0 : index
    %81 = vector.load %arg8[%c0_32, %c0_33] : memref<64x32xbf16, #tpu.memory_space<vmem>>, vector<64x32xbf16>
    %cst_34 = arith.constant dense<0.000000e+00> : vector<16x32xf32>
    %82 = tpu.matmul %80, %81, %cst_34 {dimension_numbers = #tpu.dot_dimension_numbers<[1], [0], [0], [1], [0, 0, 1, 1], [], []>} : vector<16x64xbf16>, vector<64x32xbf16>, vector<16x32xf32> -> vector<16x32xf32>
    %83 = vector.extract_strided_slice %0 {offsets = [2, 0], sizes = [1, 32], strides = [1, 1]} : vector<7x32xf32> to vector<1x32xf32>
    %84 = vector.broadcast %83 : vector<1x32xf32> to vector<16x32xf32>
    %85 = arith.addf %82, %84 : vector<16x32xf32>
    %86 = arith.addf %71, %85 : vector<16x32xf32>
    %cst_35 = arith.constant dense<0.000000e+00> : vector<16xf32>
    %87 = vector.multi_reduction <add>, %86, %cst_35 [1] : vector<16x32xf32> to vector<16xf32>
    %88 = vector.shape_cast %87 : vector<16xf32> to vector<16x1xf32>
    %cst_36 = arith.constant 3.200000e+01 : f32
    %89 = vector.broadcast %cst_36 : f32 to vector<16x1xf32>
    %90 = arith.divf %88, %89 : vector<16x1xf32>
    %91 = arith.mulf %86, %86 : vector<16x32xf32>
    %cst_37 = arith.constant dense<0.000000e+00> : vector<16xf32>
    %92 = vector.multi_reduction <add>, %91, %cst_37 [1] : vector<16x32xf32> to vector<16xf32>
    %93 = vector.shape_cast %92 : vector<16xf32> to vector<16x1xf32>
    %cst_38 = arith.constant 3.200000e+01 : f32
    %94 = vector.broadcast %cst_38 : f32 to vector<16x1xf32>
    %95 = arith.divf %93, %94 : vector<16x1xf32>
    %96 = arith.mulf %90, %90 : vector<16x1xf32>
    %97 = arith.subf %95, %96 : vector<16x1xf32>
    %98 = vector.broadcast %90 : vector<16x1xf32> to vector<16x32xf32>
    %99 = arith.subf %86, %98 : vector<16x32xf32>
    %cst_39 = arith.constant 9.99999974E-6 : f32
    %100 = vector.broadcast %cst_39 : f32 to vector<16x1xf32>
    %101 = arith.addf %97, %100 : vector<16x1xf32>
    %102 = math.rsqrt %101 : vector<16x1xf32>
    %103 = vector.broadcast %102 : vector<16x1xf32> to vector<16x32xf32>
    %104 = arith.mulf %99, %103 : vector<16x32xf32>
    %105 = vector.extract_strided_slice %0 {offsets = [5, 0], sizes = [1, 32], strides = [1, 1]} : vector<7x32xf32> to vector<1x32xf32>
    %106 = vector.broadcast %105 : vector<1x32xf32> to vector<16x32xf32>
    %107 = arith.mulf %104, %106 : vector<16x32xf32>
    %108 = vector.extract_strided_slice %0 {offsets = [6, 0], sizes = [1, 32], strides = [1, 1]} : vector<7x32xf32> to vector<1x32xf32>
    %109 = vector.broadcast %108 : vector<1x32xf32> to vector<16x32xf32>
    %110 = arith.addf %107, %109 : vector<16x32xf32>
    %c0_40 = arith.constant 0 : index
    %c0_41 = arith.constant 0 : index
    %111 = vector.load %arg11[%c0_40, %c0_41] : memref<16x32xf32, #tpu.memory_space<vmem>>, vector<16x32xf32>
    tpu.vector_store %arg11[%c0_40, %c0_41], %110 {strides = array<i32>} : memref<16x32xf32, #tpu.memory_space<vmem>>, vector<16x32xf32>,
    return
  }
  func.func @transform_0(%arg0: i32) -> (i32, i32) {
    %c0_i32 = arith.constant 0 : i32
    %c0_i32_0 = arith.constant 0 : i32
    return %arg0, %c0_i32 : i32, i32
  }
  func.func @transform_1(%arg0: i32) -> (i32, i32) {
    %c0_i32 = arith.constant 0 : i32
    %c0_i32_0 = arith.constant 0 : i32
    return %arg0, %c0_i32 : i32, i32
  }
  func.func @transform_2(%arg0: i32) -> (i32, i32) {
    %c0_i32 = arith.constant 0 : i32
    %c0_i32_0 = arith.constant 0 : i32
    %c0_i32_1 = arith.constant 0 : i32
    return %c0_i32, %c0_i32_0 : i32, i32
  }
  func.func @transform_3(%arg0: i32) -> (i32, i32) {
    %c0_i32 = arith.constant 0 : i32
    %c0_i32_0 = arith.constant 0 : i32
    %c0_i32_1 = arith.constant 0 : i32
    return %c0_i32, %c0_i32_0 : i32, i32
  }
  func.func @transform_4(%arg0: i32) -> (i32, i32) {
    %c0_i32 = arith.constant 0 : i32
    %c0_i32_0 = arith.constant 0 : i32
    %c0_i32_1 = arith.constant 0 : i32
    return %c0_i32, %c0_i32_0 : i32, i32
  }
  func.func @transform_5(%arg0: i32) -> (i32, i32, i32) {
    %c0_i32 = arith.constant 0 : i32
    %c0_i32_0 = arith.constant 0 : i32
    %c0_i32_1 = arith.constant 0 : i32
    %c0_i32_2 = arith.constant 0 : i32
    return %c0_i32, %c0_i32_0, %c0_i32_1 : i32, i32, i32
  }
  func.func @transform_6(%arg0: i32) -> (i32, i32) {
    %c0_i32 = arith.constant 0 : i32
    %c0_i32_0 = arith.constant 0 : i32
    %c0_i32_1 = arith.constant 0 : i32
    return %c0_i32, %c0_i32_0 : i32, i32
  }
  func.func @transform_7(%arg0: i32) -> (i32, i32) {
    %c0_i32 = arith.constant 0 : i32
    %c0_i32_0 = arith.constant 0 : i32
    %c0_i32_1 = arith.constant 0 : i32
    return %c0_i32, %c0_i32_0 : i32, i32
  }
  func.func @transform_8(%arg0: i32) -> (i32, i32) {
    %c0_i32 = arith.constant 0 : i32
    %c0_i32_0 = arith.constant 0 : i32
    %c0_i32_1 = arith.constant 0 : i32
    return %c0_i32, %c0_i32_0 : i32, i32
  }
  func.func @transform_9(%arg0: i32) -> (i32, i32) {
    %c0_i32 = arith.constant 0 : i32
    %c0_i32_0 = arith.constant 0 : i32
    %c0_i32_1 = arith.constant 0 : i32
    return %c0_i32, %c0_i32_0 : i32, i32
  }
  func.func @transform_10(%arg0: i32) -> (i32, i32) {
    %c0_i32 = arith.constant 0 : i32
    %c0_i32_0 = arith.constant 0 : i32
    return %arg0, %c0_i32 : i32, i32
  }
}

</mosaic_0001>

<bundles_post_ra>
// kernel: tpu_custom_call.1
= control target key start
LH: loop header
LB: loop body
LE: loop exit
PB: predicated region body
PF: predicated region fallthrough
CT: control target
= control target key end

     0   :  { %s3367_s0 = inlined_call_operand.vmem [shape: f32[32,32], index: 0, kind: input, shape index: {}]   ;;  %s3368_s1 = inlined_call_operand.hbm [shape: f32[32,32], index: 1, kind: input, shape index: {}]   ;;  %s3369_s2 = inlined_call_operand.vmem [shape: bf16[32,64], index: 2, kind: input, shape index: {}]   ;;  %s3370_s3 = inlined_call_operand.hbm [shape: f32[1,64], index: 3, kind: input, shape index: {}]   ;;  %s3371_s4 = inlined_call_operand.hbm [shape: bf16[32,32], index: 4, kind: input, shape index: {}]   ;;  %s3372_s5 = inlined_call_operand.hbm [shape: bf16[4,8,32], index: 5, kind: input, shape index: {}]   ;;  %s3373_s6 = inlined_call_operand.hbm [shape: bf16[32,64], index: 6, kind: input, shape index: {}]   ;;  %s3374_s7 = inlined_call_operand.vmem [shape: bf16[64,32], index: 7, kind: input, shape index: {}]   ;;  %s3375_s8 = inlined_call_operand.hbm [shape: f32[1,64], index: 8, kind: input, shape index: {}]   ;;  %s3376_s9 = inlined_call_operand.vmem [shape: f32[7,32], index: 9, kind: input, shape index: {}]   ;;  %s3377_s10 = inlined_call_operand.hbm [shape: f32[32,32], index: 10, kind: output, shape index: {}]  }
   0x1   :  { %3378 = sst [smem:[#allocation19_spill]] %s3370_s3 }
   0x2   :  { %3379 = sst [smem:[#allocation20_spill]] %s3371_s4 }
   0x3   :  { %3380 = sst [smem:[#allocation21_spill]] %s3372_s5 }
   0x4   :  { %3381 = sst [smem:[#allocation22_spill]] %s3373_s6 }
   0x5   :  { %3382 = sst [smem:[#allocation23_spill]] %s3375_s8 }
   0x6   :  { %15 = vsyncpa [#allocation3], 0 }
   0x7   :  { %17 = vsyncpa [#allocation3 + $0x1], 0 }
   0x8   :  { %18 = vsyncpa [#allocation6], 0 }
   0x9   :  { %19 = vsyncpa [#allocation9], 0 }
   0xa   :  { %20 = vsyncpa [#allocation12], 0 }
   0xb   :  { %21 = vsyncpa [#allocation4], 0 }
   0xc   :  { %23 = vsyncpa [#allocation4 + $0x1], 0  ;;  %s2770_s13 = smov 0   ;;  %s2772_s14 = smov 0  }
   0xd   :  { %s2774_s15 = smov 0   ;;  %s2776_s16 = smov 0  }
   0xe LB: > { %s3383_s3 = sld [smem:[#allocation19_spill]]  ;;  %s2794_s20 = sadd.s32 4294967295, %s2695_s16   ;;  %s2695_s16 = sphi %s2776_s16, %s3399_s16   ;;  %s2691_s15 = sphi %s2774_s15, %s3398_s15   ;;  %s2687_s14 = sphi %s2772_s14, %s3397_s14   ;;  %s2683_s13 = sphi %s2770_s13, %s3396_s13  }
   0xf   : > { %p2137_p0 = scmp.ge.s32.totalorder %s2695_s16, 1  ;;  %p76_p1 = scmp.eq.s32.totalorder %s2794_s20, 0 }
  0x10   : > { %p280_p2 = scmp.lt.s32.totalorder %s2695_s16, 3  ;;  %s2697_s22 = smov [#allocation5]  }
  0x11   : > { %s297_s23 = sshll.u32 %s2697_s22, 4  ;;  %s3385_s5 = sld [smem:[#allocation21_spill]]  ;;  %s298_s23 = int_to_ptr.vmem [resolvable:$true] %s297_s23 }
  0x12   : > { %p2799_p3 = pnand %p2137_p0, %p280_p2  ;;  %s3387_s4 = sld [smem:[#allocation20_spill]] }
  0x13   : > { %s2698_s11 = smov [#allocation8]   ;;  %s2699_s17 = smov 64  }
  0x14   : > { %s295_s19 = sshll.u32 %s3383_s3, 4  ;;  %p2254_p5 = pneg %p2799_p3  ;;  %s296_s19 = int_to_ptr.hbm [resolvable:$true] %s295_s19 }
  0x15   : > { %s322_s12 = sshll.u32 %s2698_s11, 4  ;;  %s2700_s18 = smov 4   ;;  %s323_s12 = int_to_ptr.vmem [resolvable:$true] %s322_s12 }
  0x16   : > { %p2811_p6 = pnand %p2254_p5, %p76_p1  ;;  %s3388_s6 = sld [smem:[#allocation22_spill]] }
  0x17   : > { %s320_s26 = sshll.u32 %s3385_s5, 4  ;;  %s2701_s3 = smov [#allocation7]   ;;  %s321_s26 = int_to_ptr.hbm [resolvable:$true] %s320_s26 }
  0x18   : > { %s306_s30 = sshll.u32 %s3387_s4, 4  ;;  %s308_s28 = sshll.u32 %s2701_s3, 4  ;;  %s307_s30 = int_to_ptr.hbm [resolvable:$true] %s306_s30  ;;  %s309_s28 = int_to_ptr.vmem [resolvable:$true] %s308_s28 }
  0x19   : > { %2257 = dma.hbm_to_vmem [thread:$0]  (!%p2811_p6), %s296_s19, 16, %s298_s23, [#allocation6]  }
  0x1a   : > { %2263 = dma.hbm_to_vmem [thread:$0]  (!%p2811_p6), %s321_s26, 256, %s323_s12, [#allocation9], %s2699_s17, %s2699_s17, %s2700_s18  }
  0x1b   : > { %2260 = dma.hbm_to_vmem [thread:$0]  (!%p2811_p6), %s307_s30, 256, %s309_s28, [#allocation6], %s2699_s17, %s2699_s17, %s2700_s18  }
  0x1c   : > { %s334_s25 = sshll.u32 %s3388_s6, 4  ;;  %s2702_s19 = smov [#allocation10]   ;;  %s335_s25 = int_to_ptr.hbm [resolvable:$true] %s334_s25 }
  0x1d   : > { %s336_s23 = sshll.u32 %s2702_s19, 4  ;;  %s3389_s8 = sld [smem:[#allocation23_spill]]  ;;  %s337_s23 = int_to_ptr.vmem [resolvable:$true] %s336_s23 }
  0x1e   : > { %2266 = dma.hbm_to_vmem [thread:$0]  (!%p2811_p6), %s335_s25, 256, %s337_s23, [#allocation9], %s2699_s17, %s2699_s17, %s2700_s18  }
  0x1f   : > { %s2703_s3 = smov [#allocation11]   ;;  %s2136_s30 = sadd.s32 4294967294, %s2695_s16  }
  0x20   : > { %s354_s12 = sshll.u32 %s2703_s3, 4  ;;  %s2836_s22 = sadd.s32 1, %s2695_s16   ;;  %s355_s12 = int_to_ptr.vmem [resolvable:$true] %s354_s12 }
  0x21   : > { %s62_s24 = sadd.s32 1, %s2691_s15  ;;  %s59_s28 = ssub.s32 %s2695_s16, %s2836_s22 }
  0x22   : > { %p69_p7 = scmp.ne.s32.totalorder %s2691_s15, %s2687_s14  ;;  %p60_p8 = scmp.eq.s32.totalorder %s59_s28, 0 }
  0x23   : > { %s352_s11 = sshll.u32 %s3389_s8, 4  ;;  %p70_p9 = scmp.eq.s32.totalorder %s2695_s16, 0  ;;  %s353_s11 = int_to_ptr.hbm [resolvable:$true] %s352_s11 }
  0x24   : > { %2269 = dma.hbm_to_vmem [thread:$0]  (!%p2811_p6), %s353_s11, 16, %s355_s12, [#allocation12]  }
  0x25   : > { %p75_p10 = scmp.ne.s32.totalorder %s2687_s14, %s2683_s13  ;;  %p267_p11 = scmp.eq.s32.totalorder %s2794_s20, 1 }
  0x26   : > { %s2848_s17 = scalar_select %p60_p8, %s2691_s15, %s62_s24  }
  0x27   : > { %p2850_p12 = por %p70_p9, %p69_p7  ;;  %p2856_p13 = por %p76_p1, %p75_p10 }
  0x28   : > { %p2860_p0 = por %p267_p11, %p69_p7  ;;  %p273_p2 = scmp.eq.s32.totalorder %s2136_s30, 1 }
  0x29   : > { %p2283_p5 = scmp.lt.s32.totalorder %s2695_s16, 2  ;;  %s377_s19 = sand.u32 1, %s2691_s15  }
  0x2a   : > { %p2866_p6 = por %p273_p2, %p75_p10  ;;  %s2144_s26 = sshll.u32 %s377_s19, 4 }
  0x2b   : > { %s2218_s29 = sshll.u32 %s2695_s16, 4  ;;  %s381_s28 = scalar_lea.vmem [#allocation2], %s2144_s26 }
  0x2c   : > { %s386_s12 = scalar_lea.hbm %s3368_s1, %s2218_s29  ;;  %s389_s4 = sshll.u32 %s381_s28, 4  ;;  %s390_s4 = int_to_ptr.vmem [resolvable:$true] %s389_s4 }
  0x2d   : > { %s387_s24 = sshll.u32 %s386_s12, 4  ;;  %p2876_p7 = pnand %p2283_p5, %p2850_p12  ;;  %s388_s24 = int_to_ptr.hbm [resolvable:$true] %s387_s24 }
  0x2e   : > { %s378_s5 = scalar_lea.sflag [#allocation3], %s377_s19  ;;  %s2587_s6 = sshra.s32 %s388_s24, 4  ;;  %s2588_s6 = int_to_ptr.hbm [resolvable:$true] %s2587_s6 }
  0x2f   : > { %s2589_s8 = scalar_lea.hbm %s2588_s6, 16  ;;  %p2591_p9 = pneg %p2876_p7 }
  0x30   : > { %p2590_p8 = scmp.ne.s32.totalorder %s2588_s6, %s2589_s8  ;;  %s2594_s11 = scalar_lea.hbm %s3368_s1, 32 }
  0x31   : > { %p2595_p12 = scmp.lt.s32.totalorder %s2588_s6, %s3368_s1  ;;  %p2596_p2 = scmp.lt.s32.totalorder %s2594_s11, %s2589_s8 }
  0x32   : > { %p2592_p10 = pnand %p2591_p9, %p2590_p8 }
  0x33   : > { %p2597_p5 = por %p2596_p2, %p2595_p12 }
  0x34   : > { %p2593_p11 = pneg %p2592_p10 }
  0x36   : > { %p2598_p4 = pnand %p2597_p5, %p2593_p11 }
  0x38   : > { %2601 = shalt.err (!%p2598_p4)
}
  0x39   : > { %s2704_s19 = smov 128   ;;  %s2705_s12 = smov 8  }
  0x3a   : > { %2273 = dma.hbm_to_vmem [thread:$0]  (!%p2876_p7), %s388_s24, 256, %s390_s4, %s378_s5, %s2704_s19, %s2704_s19, %s2705_s12  }
  0x3b   : > { %401 = sbr.rel (%p2799_p3) target bundleno = 1671 (0x687), region = 60  ;;  %s2893_s28 = sand.u32 (!%p2799_p3), 1, %s2687_s14  }
  0x3c   : > { %s2148_s6 = sshll.u32 (!%p2799_p3), %s2893_s28, 4  ;;  %s404_s8 = scalar_lea.sflag (!%p2799_p3), [#allocation3], %s2893_s28 }
  0x3d   : > { %s407_s29 = scalar_lea.vmem (!%p2799_p3), [#allocation2], %s2148_s6 }
  0x40   : > { %2662 = dma.done.wait (%p2856_p13), %s404_s8, 256  }
  0x41   : > { %2664 = vsyncadd (%p2856_p13), %s404_s8, 4294967040 }
  0x42   : > { %2666 = dma.done.wait (%p76_p1), [#allocation6], 272  }
  0x43   : > { %2668 = vsyncadd (%p76_p1), [#allocation6], 4294967024 }
  0x44   : > { %2670 = dma.done.wait (%p76_p1), [#allocation9], 512  }
  0x45   : > { %2672 = vsyncadd (%p76_p1), [#allocation9], 4294966784 }
  0x46   : > { %2674 = dma.done.wait (%p76_p1), [#allocation12], 16  }
  0x47   : > { %2676 = vsyncadd (%p76_p1), [#allocation12], 4294967280  ;;  %s2155_s4 = sshll.u32 %s2794_s20, 1  ;;  %v2220_v0 = vld [vmem:[%s3369_s2 + $0x8] sm:$0xff]  ;;  %v487_v3 = vld [vmem:[%s407_s29] sm:$0xff]  ;;  %vm513_vm0 = vcmask 261120  }
  0x48   : > { %p476_p3 = scmp.lt.s32.totalorder %s2155_s4, 3  ;;  %v488_v4 = vld [vmem:[%s407_s29 + $0x8] sm:$0xff]  ;;  %523 = vmatpush.bf16.msra.mxu0 %v2220_v0  ;;  %v2219_v5 = vld [vmem:[%s3369_s2] sm:$0xff]  ;;  %s2706_s18 = smov 104   ;;  %v2710_v18 = vmov 1983009808  }
  0x49   : > { %v2222_v9 = vld [vmem:[#allocation7 + $0x8] sm:$0xff]  ;;  %v2221_v10 = vld [vmem:[#allocation7] sm:$0xff]  ;;  %v2390_v13 = vld [vmem:[#allocation5] ss:$0 sm:$0xff]  ;;  %s2707_s19 = smov 112   ;;  %s2708_s12 = smov 96   ;;  %v591_v19 = vunpack.c.l.s4 %v2710_v18 }
  0x4a   : > { %s3401_s4 = smov (!%p476_p3, %s2155_s4), 3  ;;  %557 = vmatpush.bf16.msra.mxu1 %v2222_v9  ;;  %s2709_s8 = smov 120   ;;  %vm586_vm1 = vcmask 1047556   ;;  %v2711_v35 = vmov 1934713408   ;;  %vm1324_vm2 = vcmask 64512  }
  0x4b   : > { %s2156_s5 = sshll.u32 %s3401_s4, 3  ;;  %v2935_v27 = vunpack.c.0.s8 %v591_v19  ;;  %v615_v36 = vunpack.c.l.s4 %v2711_v35  ;;  %vm1435_vm3 = vcmask 130048   ;;  %vm1664_vm4 = vcmask 1043456   ;;  %s1988_s27 = scalar_lea.sflag [#allocation4], %s2893_s28 }
  0x4c   : > { %s2919_s24 = scalar_lea.vmem %s3367_s0, %s2156_s5  ;;  %524 = vmatpush.bf16.msra.mxu0 %v2219_v5  ;;  %vm1911_vm12 = vcmask 523264   ;;  %s474_s5 = scalar_lea.vmem [#allocation13], %s2148_s6 }
  0x4d   : > { %v485_v1 = vld [vmem:[%s2919_s24] sm:$0xff]  ;;  %v486_v2 = vld [vmem:[%s2919_s24 + $0x8] sm:$0xff]  ;;  %v2947_v45 = vunpack.c.0.s8 %v615_v36  ;;  %s2637_s11 = scalar_lea.hbm %s3377_s10, 32 }
  0x4e   : > { %v489_v6 = vadd.f32 %v487_v3, %v485_v1  ;;  %v490_v7 = vadd.f32 %v488_v4, %v486_v2  ;;  %v492_v11 = vpack.c.bf16 %v486_v2, %v485_v1  ;;  %558 = vmatpush.bf16.msra.mxu1 %v2221_v10 }
  0x50   : > { %v491_v8 = vpack.c.bf16 %v490_v7, %v489_v6 }
  0x51   : > { %2174 = vmatmul.msk.bf16.vlgmr.msra.gmra.mxu1 %vm513_vm0, %v492_v11 }
  0x52   : > { %2165 = vmatmul.msk.bf16.vlgmr.msra.gmra.mxu0 %vm513_vm0, %v491_v8 }
  0xcf   : > { %v526_v12 = vpop.f32.mrf.mxu0 }
  0xd0   : > { %v527_v15 = vadd.f32 %v2390_v13, %v526_v12 }
  0xd2   : > { %v588_v31 = vrot.slane %v527_v15, 4 }
  0xd7   : > { %v528_v14 = vpop.f32.mrf.mxu0 }
  0xd8   : > { %v529_v16 = vadd.f32 %v2390_v13, %v528_v14 }
  0xda   : > { %v2350_v17 = vpack.i.bf16 %v529_v16, %v527_v15  ;;  %v644_v26 = vrot.slane %v529_v16, 4 }
  0xdc   : > { %2351 = vrot.lane.b32.xlu1 %v2350_v17, %s2706_s18  ;;  %2341 = vrot.lane.b32.xlu0 %v2350_v17, %s2707_s19 }
  0xe4   : > { %2356 = vrot.lane.b32.xlu1 %v2350_v17, %s2708_s12  ;;  %2346 = vrot.lane.b32.xlu0 %v2350_v17, %s2709_s8 }
 0x14e   : > { %v2352_v20 = vpop.permute.xlu1 %2351  ;;  %v2342_v21 = vpop.permute.xlu0 %2341 }
 0x14f   : > { %v2354_v22 = vunpack.i.h.bf16 %v2352_v20  ;;  %v2353_v23 = vunpack.i.l.bf16 %v2352_v20  ;;  %v2344_v24 = vunpack.i.h.bf16 %v2342_v21  ;;  %v2343_v25 = vunpack.i.l.bf16 %v2342_v21  ;;  %2371 = vrot.lane.b32.xlu0 %v2352_v20, %s2708_s12  ;;  %2361 = vrot.lane.b32.xlu2 %v2342_v21, %s2708_s12 }
 0x151   : > { %v642_v28 = vrot.slane %v2344_v24, 4  ;;  %v645_v29 = vsel %vm586_vm1, %v2344_v24, %v644_v26  ;;  %v585_v30 = vrot.slane %v2343_v25, 4  ;;  %v589_v34 = vsel %vm586_vm1, %v2343_v25, %v588_v31 }
 0x152   : > { %v653_v38 = vperm.slane %v645_v29, %v2935_v27  ;;  %v654_v40 = vrot.slane %v2354_v22, 4  ;;  %v597_v42 = vperm.slane %v589_v34, %v2935_v27  ;;  %v598_v44 = vrot.slane %v2353_v23, 4 }
 0x153   : > { %v643_v32 = vsel %vm586_vm1, %v642_v28, %v529_v16  ;;  %v587_v33 = vsel %vm586_vm1, %v585_v30, %v527_v15 }
 0x154   : > { %v649_v37 = vperm.slane %v643_v32, %v2935_v27  ;;  %v593_v41 = vperm.slane %v587_v33, %v2935_v27  ;;  %v680_v48 = vrot.slane %v653_v38, 4  ;;  %v624_v55 = vrot.slane %v597_v42, 4 }
 0x156   : > { %v2347_v39 = vpop.permute.xlu0 %2346  ;;  %v668_v47 = vrot.slane %v649_v37, 4  ;;  %v612_v54 = vrot.slane %v593_v41, 4 }
 0x157   : > { %v2349_v43 = vunpack.i.h.bf16 %v2347_v39  ;;  %v2348_v46 = vunpack.i.l.bf16 %v2347_v39  ;;  %2366 = vrot.lane.b32.xlu2 %v2347_v39, %s2708_s12  ;;  %s2229_s12 = sshll.u32 %s2794_s20, 4  ;;  %s2000_s20 = sshll.u32 %s474_s5, 4  ;;  %s2001_s20 = int_to_ptr.vmem [resolvable:$true] %s2000_s20 }
 0x158   : > { %s1999_s4 = scalar_lea.hbm %s3377_s10, %s2229_s12 }
 0x159   : > { %v655_v49 = vsel %vm586_vm1, %v654_v40, %v2349_v43  ;;  %v656_v50 = vrot.slane %v2349_v43, 4  ;;  %v599_v52 = vsel %vm586_vm1, %v598_v44, %v2348_v46  ;;  %v600_v53 = vrot.slane %v2348_v46, 4  ;;  %s2002_s21 = sshll.u32 %s1999_s4, 4  ;;  %s2003_s21 = int_to_ptr.hbm [resolvable:$true] %s2002_s21 }
 0x15a   : > { %v661_v51 = vperm.slane %v655_v49, %v2935_v27  ;;  %v605_v57 = vperm.slane %v599_v52, %v2935_v27 }
 0x15b   : > { %v657_v56 = vsel %vm586_vm1, %v2354_v22, %v656_v50  ;;  %v601_v60 = vsel %vm586_vm1, %v2353_v23, %v600_v53 }
 0x15c   : > { %v665_v58 = vperm.slane %v657_v56, %v2935_v27  ;;  %v666_v59 = vrot.slane %v661_v51, 4  ;;  %v669_v61 = vsel %vm586_vm1, %v661_v51, %v668_v47  ;;  %v609_v62 = vperm.slane %v601_v60, %v2935_v27 }
 0x15d   : > { %v610_v63 = vrot.slane %v605_v57, 4  ;;  %v613_v0 = vsel %vm586_vm1, %v605_v57, %v612_v54  ;;  %v677_v1 = vperm.slane %v669_v61, %v2947_v45 }
 0x15e   : > { %v678_v2 = vrot.slane %v665_v58, 4  ;;  %v621_v3 = vperm.slane %v613_v0, %v2947_v45  ;;  %v667_v4 = vsel %vm586_vm1, %v666_v59, %v649_v37  ;;  %v681_v5 = vsel %vm586_vm1, %v665_v58, %v680_v48 }
 0x15f   : > { %v611_v6 = vsel %vm586_vm1, %v610_v63, %v593_v41  ;;  %v622_v7 = vrot.slane %v609_v62, 4  ;;  %v625_v8 = vsel %vm586_vm1, %v609_v62, %v624_v55  ;;  %v673_v9 = vperm.slane %v667_v4, %v2947_v45 }
 0x160   : > { %v617_v10 = vperm.slane %v611_v6, %v2947_v45  ;;  %v633_v11 = vperm.slane %v625_v8, %v2947_v45  ;;  %v636_v12 = vrot.slane %v621_v3, 4  ;;  %v679_v13 = vsel %vm586_vm1, %v678_v2, %v653_v38 }
 0x161   : > { %v623_v14 = vsel %vm586_vm1, %v622_v7, %v597_v42  ;;  %v685_v15 = vperm.slane %v679_v13, %v2947_v45  ;;  %v689_v16 = vperm.slane %v681_v5, %v2947_v45  ;;  %v690_v17 = vrot.slane %v673_v9, 4 }
 0x162   : > { %v629_v18 = vperm.slane %v623_v14, %v2947_v45  ;;  %v634_v19 = vrot.slane %v617_v10, 4  ;;  %v637_v20 = vsel %vm586_vm1, 0.0, %v636_v12  ;;  %v640_v21 = vrot.slane %v633_v11, 4 }
 0x163   : > { %v691_v22 = vsel %vm586_vm1, 0.0, %v690_v17  ;;  %v692_v23 = vrot.slane %v677_v1, 4  ;;  %v694_v24 = vrot.slane %v685_v15, 4  ;;  %v696_v25 = vrot.slane %v689_v16, 4 }
 0x164   : > { %v635_v26 = vsel %vm586_vm1, 0.0, %v634_v19  ;;  %v638_v28 = vrot.slane %v629_v18, 4  ;;  %v641_v29 = vsel %vm586_vm1, 0.0, %v640_v21  ;;  %v698_v30 = vsel %vm586_vm1, %v636_v12, %v617_v10 }
 0x165   : > { %v693_v31 = vsel %vm586_vm1, 0.0, %v692_v23  ;;  %v695_v32 = vsel %vm586_vm1, 0.0, %v694_v24  ;;  %v697_v33 = vsel %vm586_vm1, 0.0, %v696_v25  ;;  %v702_v34 = vperm.slane %v698_v30, %v2935_v27 }
 0x166   : > { %v639_v35 = vsel %vm586_vm1, 0.0, %v638_v28  ;;  %v703_v36 = vrot.slane %v637_v20, 4  ;;  %v709_v37 = vsel %vm586_vm1, %v640_v21, %v629_v18  ;;  %v714_v38 = vrot.slane %v641_v29, 4 }
 0x167   : > { %v713_v39 = vperm.slane %v709_v37, %v2935_v27  ;;  %v752_v40 = vsel %vm586_vm1, %v692_v23, %v673_v9  ;;  %v757_v41 = vrot.slane %v693_v31, 4  ;;  %v763_v42 = vsel %vm586_vm1, %v696_v25, %v685_v15 }
 0x168   : > { %v704_v43 = vsel %vm586_vm1, %v703_v36, %v635_v26  ;;  %v756_v44 = vperm.slane %v752_v40, %v2935_v27  ;;  %v767_v46 = vperm.slane %v763_v42, %v2935_v27  ;;  %v768_v47 = vrot.slane %v697_v33, 4 }
 0x169   : > { %v758_v48 = vsel %vm586_vm1, %v757_v41, %v691_v22  ;;  %v708_v49 = vperm.slane %v704_v43, %v2935_v27  ;;  %v715_v50 = vsel %vm586_vm1, %v714_v38, %v639_v35  ;;  %v722_v51 = vrot.slane %v702_v34, 4 }
 0x16a   : > { %v719_v52 = vperm.slane %v715_v50, %v2935_v27  ;;  %v734_v53 = vrot.slane %v713_v39, 4  ;;  %v762_v54 = vperm.slane %v758_v48, %v2935_v27  ;;  %v769_v55 = vsel %vm586_vm1, %v768_v47, %v695_v32 }
 0x16b   : > { %v723_v56 = vsel %vm586_vm1, %v708_v49, %v722_v51  ;;  %v773_v57 = vperm.slane %v769_v55, %v2935_v27  ;;  %v776_v58 = vrot.slane %v756_v44, 4  ;;  %v788_v59 = vrot.slane %v767_v46, 4 }
 0x16c   : > { %v731_v60 = vperm.slane %v723_v56, %v2947_v45  ;;  %v735_v61 = vsel %vm586_vm1, %v719_v52, %v734_v53  ;;  %v720_v62 = vrot.slane %v708_v49, 4  ;;  %v732_v63 = vrot.slane %v719_v52, 4  ;;  %v560_v53 = vpop.f32.mrf.mxu1 }
 0x16d   : > { %v743_v0 = vperm.slane %v735_v61, %v2947_v45  ;;  %v777_v1 = vsel %vm586_vm1, %v762_v54, %v776_v58  ;;  %v789_v2 = vsel %vm586_vm1, %v773_v57, %v788_v59  ;;  %v774_v3 = vrot.slane %v762_v54, 4  ;;  %v484_v54 = vld [vmem:[%s3376_s9] sm:$0x7f]  ;;  %v2357_v61 = vpop.permute.xlu1 %2356 }
 0x16e   : > { %v785_v4 = vperm.slane %v777_v1, %v2947_v45  ;;  %v797_v5 = vperm.slane %v789_v2, %v2947_v45  ;;  %v721_v6 = vsel %vm586_vm1, %v720_v62, %v702_v34  ;;  %v733_v7 = vsel %vm586_vm1, %v732_v63, %v713_v39 }
 0x16f   : > { %v748_v8 = vrot.slane %v743_v0, 4  ;;  %v727_v9 = vperm.slane %v721_v6, %v2947_v45  ;;  %v739_v10 = vperm.slane %v733_v7, %v2947_v45  ;;  %v775_v11 = vsel %vm586_vm1, %v774_v3, %v756_v44 }
 0x170   : > { %v802_v12 = vrot.slane %v797_v5, 4  ;;  %v781_v13 = vperm.slane %v775_v11, %v2947_v45  ;;  %v786_v14 = vrot.slane %v773_v57, 4  ;;  %v750_v15 = vrot.slane %v731_v60, 4 }
 0x171   : > { %v749_v16 = vsel %vm586_vm1, %v748_v8, %v731_v60  ;;  %v744_v17 = vrot.slane %v739_v10, 4  ;;  %v804_v18 = vrot.slane %v785_v4, 4  ;;  %v746_v19 = vrot.slane %v727_v9, 4 }
 0x172   : > { %v803_v20 = vsel %vm586_vm1, %v802_v12, %v785_v4  ;;  %v810_v21 = vpack.c.bf16 %v749_v16, %v749_v16  ;;  %v787_v22 = vsel %vm586_vm1, %v786_v14, %v767_v46  ;;  %v751_v23 = vsel %vm586_vm1, %v743_v0, %v750_v15 }
 0x173   : > { %v811_v24 = vpack.c.bf16 %v803_v20, %v803_v20  ;;  %v745_v25 = vsel %vm586_vm1, %v744_v17, %v727_v9  ;;  %v793_v26 = vperm.slane %v787_v22, %v2947_v45  ;;  %v805_v28 = vsel %vm586_vm1, %v797_v5, %v804_v18 }
 0x174   : > { %v3019_v29 = vunpack.c.l.b16 %v810_v21  ;;  %v806_v30 = vpack.c.bf16 %v745_v25, %v745_v25  ;;  %v812_v31 = vpack.c.bf16 %v751_v23, %v751_v23  ;;  %v813_v32 = vpack.c.bf16 %v805_v28, %v805_v28  ;;  %v562_v56 = vpop.f32.mrf.mxu1 }
 0x175   : > { %v3021_v33 = vunpack.c.l.b16 %v811_v24  ;;  %v798_v34 = vrot.slane %v793_v26, 4  ;;  %v747_v35 = vsel %vm586_vm1, %v739_v10, %v746_v19  ;;  %v800_v36 = vrot.slane %v781_v13, 4 }
 0x176   : > { %v3024_v37 = vunpack.c.l.b16 %v812_v31  ;;  %v3026_v38 = vunpack.c.l.b16 %v813_v32  ;;  %v808_v39 = vpack.c.bf16 %v747_v35, %v747_v35  ;;  %v3031_v42 = vunpack.c.l.b16 %v806_v30 }
 0x177   : > { %v1379_v40 = vpack.c.b16 %v3021_v33, %v3019_v29  ;;  %v799_v41 = vsel %vm586_vm1, %v798_v34, %v781_v13  ;;  %v801_v43 = vsel %vm586_vm1, %v793_v26, %v800_v36  ;;  %v535_v55 = vperm.slane %v484_v54, 0 }
 0x178   : > { %v807_v44 = vpack.c.bf16 %v799_v41, %v799_v41  ;;  %v1409_v46 = vpack.c.b16 %v3026_v38, %v3024_v37  ;;  %v809_v47 = vpack.c.bf16 %v801_v43, %v801_v43  ;;  %v3036_v48 = vunpack.c.l.b16 %v808_v39 }
 0x179   : > { %v3049_v57 = vadd.f32 %v560_v53, %v535_v55  ;;  %v3051_v58 = vadd.f32 %v562_v56, %v535_v55  ;;  %v2359_v63 = vunpack.i.h.bf16 %v2357_v61  ;;  %v2358_v0 = vunpack.i.l.bf16 %v2357_v61 }
 0x17a   : > { %v3038_v49 = vunpack.c.l.b16 %v807_v44  ;;  %v3040_v50 = vunpack.c.l.b16 %v809_v47 }
 0x17b   : > { %v2375_v59 = vpack.i.bf16 %v3051_v58, %v3049_v57  ;;  %v896_v3 = vrot.slane %v2359_v63, 4  ;;  %v840_v5 = vrot.slane %v2358_v0, 4  ;;  %v1144_v33 = vrot.slane %v3051_v58, 4 }
 0x17c   : > { %v1318_v51 = vpack.c.b16 %v3038_v49, %v3031_v42  ;;  %v1349_v52 = vpack.c.b16 %v3040_v50, %v3036_v48 }
 0x17d   : > { %2376 = vrot.lane.b32.xlu1 %v2375_v59, %s2707_s19  ;;  %2386 = vrot.lane.b32.xlu0 %v2375_v59, %s2706_s18 }
 0x17e   : > { %2381 = vrot.lane.b32.xlu2 %v2375_v59, %s2709_s8 }
 0x1a9   : > { %v2362_v60 = vpop.permute.xlu2 %2361 }
 0x1aa   : > { %v2363_v62 = vunpack.i.l.bf16 %v2362_v60  ;;  %v2364_v1 = vunpack.i.h.bf16 %v2362_v60 }
 0x1ac   : > { %v838_v2 = vrot.slane %v2363_v62, 4  ;;  %v894_v6 = vrot.slane %v2364_v1, 4  ;;  %v897_v7 = vsel %vm586_vm1, %v2364_v1, %v896_v3  ;;  %v841_v9 = vsel %vm586_vm1, %v2363_v62, %v840_v5 }
 0x1ad   : > { %v905_v13 = vperm.slane %v897_v7, %v2935_v27  ;;  %v849_v15 = vperm.slane %v841_v9, %v2935_v27 }
 0x1ae   : > { %v839_v8 = vsel %vm586_vm1, %v838_v2, %v2358_v0  ;;  %v895_v12 = vsel %vm586_vm1, %v894_v6, %v2359_v63 }
 0x1af   : > { %v845_v14 = vperm.slane %v839_v8, %v2935_v27  ;;  %v901_v21 = vperm.slane %v895_v12, %v2935_v27  ;;  %v876_v26 = vrot.slane %v849_v15, 4  ;;  %v932_v31 = vrot.slane %v905_v13, 4 }
 0x1b1   : > { %v2367_v4 = vpop.permute.xlu2 %2366  ;;  %v864_v32 = vrot.slane %v845_v14, 4  ;;  %v920_v44 = vrot.slane %v901_v21, 4 }
 0x1b2   : > { %v2369_v10 = vunpack.i.h.bf16 %v2367_v4  ;;  %v2368_v11 = vunpack.i.l.bf16 %v2367_v4 }
 0x1b4   : > { %v908_v17 = vrot.slane %v2369_v10, 4  ;;  %v852_v18 = vrot.slane %v2368_v11, 4 }
 0x1c1   : > { %v2372_v16 = vpop.permute.xlu0 %2371 }
 0x1c2   : > { %v2374_v19 = vunpack.i.h.bf16 %v2372_v16  ;;  %v2373_v20 = vunpack.i.l.bf16 %v2372_v16 }
 0x1c4   : > { %v906_v22 = vrot.slane %v2374_v19, 4  ;;  %v850_v23 = vrot.slane %v2373_v20, 4  ;;  %v853_v24 = vsel %vm586_vm1, %v2373_v20, %v852_v18  ;;  %v909_v25 = vsel %vm586_vm1, %v2374_v19, %v908_v17 }
 0x1c5   : > { %v861_v28 = vperm.slane %v853_v24, %v2935_v27  ;;  %v917_v30 = vperm.slane %v909_v25, %v2935_v27 }
 0x1c6   : > { %v851_v34 = vsel %vm586_vm1, %v850_v23, %v2368_v11  ;;  %v907_v35 = vsel %vm586_vm1, %v906_v22, %v2369_v10 }
 0x1c7   : > { %v857_v36 = vperm.slane %v851_v34, %v2935_v27  ;;  %v874_v39 = vrot.slane %v861_v28, 4  ;;  %v877_v41 = vsel %vm586_vm1, %v861_v28, %v876_v26  ;;  %v913_v43 = vperm.slane %v907_v35, %v2935_v27 }
 0x1c8   : > { %v885_v47 = vperm.slane %v877_v41, %v2947_v45  ;;  %v930_v53 = vrot.slane %v917_v30, 4  ;;  %v933_v54 = vsel %vm586_vm1, %v917_v30, %v932_v31 }
 0x1c9   : > { %v862_v55 = vrot.slane %v857_v36, 4  ;;  %v865_v56 = vsel %vm586_vm1, %v857_v36, %v864_v32  ;;  %v875_v59 = vsel %vm586_vm1, %v874_v39, %v849_v15  ;;  %v918_v60 = vrot.slane %v913_v43, 4 }
 0x1ca   : > { %v873_v61 = vperm.slane %v865_v56, %v2947_v45  ;;  %v881_v62 = vperm.slane %v875_v59, %v2947_v45  ;;  %v892_v63 = vrot.slane %v885_v47, 4  ;;  %v921_v0 = vsel %vm586_vm1, %v913_v43, %v920_v44 }
 0x1cb   : > { %v863_v1 = vsel %vm586_vm1, %v862_v55, %v845_v14  ;;  %v919_v2 = vsel %vm586_vm1, %v918_v60, %v901_v21  ;;  %v929_v3 = vperm.slane %v921_v0, %v2947_v45  ;;  %v931_v4 = vsel %vm586_vm1, %v930_v53, %v905_v13 }
 0x1cc   : > { %v869_v5 = vperm.slane %v863_v1, %v2947_v45  ;;  %v888_v6 = vrot.slane %v873_v61, 4  ;;  %v890_v7 = vrot.slane %v881_v62, 4  ;;  %v893_v8 = vsel %vm586_vm1, 0.0, %v892_v63 }
 0x1cd   : > { %v925_v9 = vperm.slane %v919_v2, %v2947_v45  ;;  %v937_v10 = vperm.slane %v931_v4, %v2947_v45  ;;  %v941_v11 = vperm.slane %v933_v54, %v2947_v45  ;;  %v944_v12 = vrot.slane %v929_v3, 4 }
 0x1ce   : > { %v886_v14 = vrot.slane %v869_v5, 4  ;;  %v889_v15 = vsel %vm586_vm1, 0.0, %v888_v6  ;;  %v891_v16 = vsel %vm586_vm1, 0.0, %v890_v7  ;;  %v961_v13 = vsel %vm586_vm1, %v892_v63, %v881_v62 }
 0x1cf   : > { %v942_v17 = vrot.slane %v925_v9, 4  ;;  %v945_v18 = vsel %vm586_vm1, 0.0, %v944_v12  ;;  %v946_v19 = vrot.slane %v937_v10, 4  ;;  %v948_v20 = vrot.slane %v941_v11, 4 }
 0x1d0   : > { %v955_v21 = vrot.slane %v889_v15, 4  ;;  %v965_v22 = vperm.slane %v961_v13, %v2935_v27  ;;  %v966_v23 = vrot.slane %v893_v8, 4  ;;  %v1009_v24 = vrot.slane %v945_v18, 4 }
 0x1d1   : > { %v947_v25 = vsel %vm586_vm1, 0.0, %v946_v19  ;;  %v949_v26 = vsel %vm586_vm1, 0.0, %v948_v20  ;;  %v1015_v28 = vsel %vm586_vm1, %v948_v20, %v937_v10  ;;  %v887_v30 = vsel %vm586_vm1, 0.0, %v886_v14 }
 0x1d2   : > { %v1019_v31 = vperm.slane %v1015_v28, %v2935_v27  ;;  %v1020_v32 = vrot.slane %v949_v26, 4  ;;  %v943_v34 = vsel %vm586_vm1, 0.0, %v942_v17  ;;  %v950_v35 = vsel %vm586_vm1, %v888_v6, %v869_v5 }
 0x1d3   : > { %v954_v36 = vperm.slane %v950_v35, %v2935_v27  ;;  %v956_v39 = vsel %vm586_vm1, %v955_v21, %v887_v30  ;;  %v967_v41 = vsel %vm586_vm1, %v966_v23, %v891_v16  ;;  %v986_v43 = vrot.slane %v965_v22, 4 }
 0x1d4   : > { %v960_v44 = vperm.slane %v956_v39, %v2935_v27  ;;  %v971_v47 = vperm.slane %v967_v41, %v2935_v27  ;;  %v1004_v53 = vsel %vm586_vm1, %v944_v12, %v925_v9  ;;  %v1010_v54 = vsel %vm586_vm1, %v1009_v24, %v943_v34 }
 0x1d5   : > { %v974_v55 = vrot.slane %v954_v36, 4  ;;  %v1008_v56 = vperm.slane %v1004_v53, %v2935_v27  ;;  %v1014_v59 = vperm.slane %v1010_v54, %v2935_v27  ;;  %v1021_v60 = vsel %vm586_vm1, %v1020_v32, %v947_v25 }
 0x1d6   : > { %v987_v61 = vsel %vm586_vm1, %v971_v47, %v986_v43  ;;  %v1025_v62 = vperm.slane %v1021_v60, %v2935_v27  ;;  %v1040_v63 = vrot.slane %v1019_v31, 4  ;;  %v972_v0 = vrot.slane %v960_v44, 4 }
 0x1d7   : > { %v975_v1 = vsel %vm586_vm1, %v960_v44, %v974_v55  ;;  %v995_v2 = vperm.slane %v987_v61, %v2947_v45  ;;  %v1028_v3 = vrot.slane %v1008_v56, 4  ;;  %v984_v4 = vrot.slane %v971_v47, 4 }
 0x1d8   : > { %v983_v5 = vperm.slane %v975_v1, %v2947_v45  ;;  %v1041_v6 = vsel %vm586_vm1, %v1025_v62, %v1040_v63  ;;  %v973_v7 = vsel %vm586_vm1, %v972_v0, %v954_v36  ;;  %v1026_v8 = vrot.slane %v1014_v59, 4 }
 0x1d9   : > { %v1000_v9 = vrot.slane %v995_v2, 4  ;;  %v1029_v10 = vsel %vm586_vm1, %v1014_v59, %v1028_v3  ;;  %v1049_v11 = vperm.slane %v1041_v6, %v2947_v45  ;;  %v979_v12 = vperm.slane %v973_v7, %v2947_v45 }
 0x1da   : > { %v1037_v14 = vperm.slane %v1029_v10, %v2947_v45  ;;  %v985_v15 = vsel %vm586_vm1, %v984_v4, %v965_v22  ;;  %v1027_v16 = vsel %vm586_vm1, %v1026_v8, %v1008_v56  ;;  %v1038_v13 = vrot.slane %v1025_v62, 4 }
 0x1db   : > { %v1001_v17 = vsel %vm586_vm1, %v1000_v9, %v983_v5  ;;  %v1054_v18 = vrot.slane %v1049_v11, 4  ;;  %v991_v19 = vperm.slane %v985_v15, %v2947_v45  ;;  %v1033_v20 = vperm.slane %v1027_v16, %v2947_v45 }
 0x1dc   : > { %v1062_v21 = vpack.c.bf16 %v1001_v17, %v1001_v17  ;;  %v1039_v23 = vsel %vm586_vm1, %v1038_v13, %v1019_v31  ;;  %v1002_v24 = vrot.slane %v983_v5, 4  ;;  %v1056_v25 = vrot.slane %v1037_v14, 4 }
 0x1dd   : > { %v1055_v26 = vsel %vm586_vm1, %v1054_v18, %v1037_v14  ;;  %v996_v28 = vrot.slane %v991_v19, 4  ;;  %v1045_v22 = vperm.slane %v1039_v23, %v2947_v45  ;;  %v998_v30 = vrot.slane %v979_v12, 4 }
 0x1de   : > { %v1063_v32 = vpack.c.bf16 %v1055_v26, %v1055_v26  ;;  %v1382_v34 = vunpack.c.l.b16 %v1062_v21  ;;  %v1003_v35 = vsel %vm586_vm1, %v995_v2, %v1002_v24  ;;  %v1057_v36 = vsel %vm586_vm1, %v1049_v11, %v1056_v25 }
 0x1df   : > { %v997_v39 = vsel %vm586_vm1, %v996_v28, %v979_v12  ;;  %v1050_v41 = vrot.slane %v1045_v22, 4  ;;  %v1064_v43 = vpack.c.bf16 %v1003_v35, %v1003_v35  ;;  %v1065_v44 = vpack.c.bf16 %v1057_v36, %v1057_v36  ;;  %v2382_v12 = vpop.permute.xlu2 %2381 }
 0x1e0   : > { %v1383_v31 = vunpack.c.l.b16 %v1063_v32  ;;  %v1058_v47 = vpack.c.bf16 %v997_v39, %v997_v39  ;;  %v999_v53 = vsel %vm586_vm1, %v991_v19, %v998_v30  ;;  %v1052_v54 = vrot.slane %v1033_v20, 4 }
 0x1e1   : > { %v1051_v55 = vsel %vm586_vm1, %v1050_v41, %v1033_v20  ;;  %v1412_v56 = vunpack.c.l.b16 %v1064_v43  ;;  %v1413_v59 = vunpack.c.l.b16 %v1065_v44  ;;  %v1060_v60 = vpack.c.bf16 %v999_v53, %v999_v53 }
 0x1e2   : > { %v1384_v61 = vpack.c.b16 %v1383_v31, %v1382_v34  ;;  %v1059_v62 = vpack.c.bf16 %v1051_v55, %v1051_v55  ;;  %v1321_v63 = vunpack.c.l.b16 %v1058_v47  ;;  %v1053_v0 = vsel %vm586_vm1, %v1045_v22, %v1052_v54 }
 0x1e3   : > { %v1414_v1 = vpack.c.b16 %v1413_v59, %v1412_v56  ;;  %v1061_v2 = vpack.c.bf16 %v1053_v0, %v1053_v0  ;;  %v1352_v3 = vunpack.c.l.b16 %v1060_v60  ;;  %v2384_v14 = vunpack.i.h.bf16 %v2382_v12 }
 0x1e4   : > { %v1389_v4 = vsel %vm1324_vm2, %v1384_v61, 0  ;;  %v1322_v5 = vunpack.c.l.b16 %v1059_v62  ;;  %v2383_v29 = vunpack.i.l.bf16 %v2382_v12 }
 0x1e5   : > { %1398 = vmatpush.bf16.xpose.msrb.mxu0 %v1389_v4  ;;  %v1419_v6 = vsel %vm1324_vm2, %v1414_v1, 0  ;;  %v1353_v7 = vunpack.c.l.b16 %v1061_v2  ;;  %v1156_v15 = vrot.slane %v2384_v14, 4 }
 0x1e6   : > { %v1323_v8 = vpack.c.b16 %v1322_v5, %v1321_v63  ;;  %1428 = vmatpush.bf16.xpose.msrb.mxu1 %v1419_v6  ;;  %v1100_v16 = vrot.slane %v2383_v29, 4 }
 0x1e7   : > { %v1354_v9 = vpack.c.b16 %v1353_v7, %v1352_v3 }
 0x1e8   : > { %v1329_v10 = vsel %vm1324_vm2, %v1323_v8, 0 }
 0x1e9   : > { %1338 = vmatpush.bf16.xpose.msra.mxu2 %v1329_v10  ;;  %v1359_v11 = vsel %vm1324_vm2, %v1354_v9, 0 }
 0x1ea   : > { %1368 = vmatpush.bf16.xpose.msra.mxu3 %v1359_v11 }
 0x1ec   : > { %2177 = vmatmul.msk.bf16.vlgmr.msrb.gmra.mxu0 %vm1324_vm2, %v1379_v40  ;;  %v1088_v40 = vrot.slane %v3049_v57, 4 }
 0x1ed   : > { %2178 = vmatmul.msk.bf16.vlgmr.msrb.gmra.mxu1 %vm1324_vm2, %v1409_v46 }
 0x1ef   : > { %v2377_v37 = vpop.permute.xlu1 %2376  ;;  %v2387_v42 = vpop.permute.xlu0 %2386 }
 0x1f0   : > { %2175 = vmatmul.msk.bf16.vlgmr.msra.gmra.mxu2 %vm1324_vm2, %v1318_v51  ;;  %v2379_v38 = vunpack.i.h.bf16 %v2377_v37  ;;  %v2378_v46 = vunpack.i.l.bf16 %v2377_v37  ;;  %v2389_v17 = vunpack.i.h.bf16 %v2387_v42  ;;  %v2388_v18 = vunpack.i.l.bf16 %v2387_v42 }
 0x1f1   : > { %2176 = vmatmul.msk.bf16.vlgmr.msra.gmra.mxu3 %vm1324_vm2, %v1349_v52 }
 0x1f2   : > { %v1142_v49 = vrot.slane %v2379_v38, 4  ;;  %v1145_v51 = vsel %vm586_vm1, %v2379_v38, %v1144_v33  ;;  %v1086_v13 = vrot.slane %v2378_v46, 4  ;;  %v1089_v48 = vsel %vm586_vm1, %v2378_v46, %v1088_v40 }
 0x1f3   : > { %v1153_v50 = vperm.slane %v1145_v51, %v2935_v27  ;;  %v1097_v52 = vperm.slane %v1089_v48, %v2935_v27  ;;  %v1154_v26 = vrot.slane %v2389_v17, 4  ;;  %v1098_v28 = vrot.slane %v2388_v18, 4 }
 0x1f4   : > { %v1143_v19 = vsel %vm586_vm1, %v1142_v49, %v3051_v58  ;;  %v1087_v20 = vsel %vm586_vm1, %v1086_v13, %v3049_v57  ;;  %v1101_v22 = vsel %vm586_vm1, %v2388_v18, %v1100_v16  ;;  %v1157_v30 = vsel %vm586_vm1, %v2389_v17, %v1156_v15 }
 0x1f5   : > { %v1149_v21 = vperm.slane %v1143_v19, %v2935_v27  ;;  %v1180_v23 = vrot.slane %v1153_v50, 4  ;;  %v1093_v24 = vperm.slane %v1087_v20, %v2935_v27  ;;  %v1124_v25 = vrot.slane %v1097_v52, 4 }
 0x1f6   : > { %v1109_v34 = vperm.slane %v1101_v22, %v2935_v27  ;;  %v1165_v58 = vperm.slane %v1157_v30, %v2935_v27  ;;  %v1099_v57 = vsel %vm586_vm1, %v1098_v28, %v2383_v29  ;;  %v1155_v36 = vsel %vm586_vm1, %v1154_v26, %v2384_v14 }
 0x1f7   : > { %v1112_v32 = vrot.slane %v1093_v24, 4  ;;  %v1168_v35 = vrot.slane %v1149_v21, 4  ;;  %v1105_v39 = vperm.slane %v1099_v57, %v2935_v27  ;;  %v1161_v44 = vperm.slane %v1155_v36, %v2935_v27 }
 0x1f8   : > { %v1122_v41 = vrot.slane %v1109_v34, 4  ;;  %v1125_v43 = vsel %vm586_vm1, %v1109_v34, %v1124_v25  ;;  %v1178_v47 = vrot.slane %v1165_v58, 4  ;;  %v1181_v53 = vsel %vm586_vm1, %v1165_v58, %v1180_v23 }
 0x1f9   : > { %v1133_v31 = vperm.slane %v1125_v43, %v2947_v45  ;;  %v1110_v54 = vrot.slane %v1105_v39, 4  ;;  %v1113_v55 = vsel %vm586_vm1, %v1105_v39, %v1112_v32  ;;  %v1166_v59 = vrot.slane %v1161_v44, 4 }
 0x1fa   : > { %v1123_v56 = vsel %vm586_vm1, %v1122_v41, %v1097_v52  ;;  %v1121_v60 = vperm.slane %v1113_v55, %v2947_v45  ;;  %v1169_v63 = vsel %vm586_vm1, %v1161_v44, %v1168_v35  ;;  %v1179_v3 = vsel %vm586_vm1, %v1178_v47, %v1153_v50 }
 0x1fb   : > { %v1129_v61 = vperm.slane %v1123_v56, %v2947_v45  ;;  %v1140_v62 = vrot.slane %v1133_v31, 4  ;;  %v1111_v0 = vsel %vm586_vm1, %v1110_v54, %v1093_v24  ;;  %v1167_v1 = vsel %vm586_vm1, %v1166_v59, %v1149_v21 }
 0x1fc   : > { %v1177_v2 = vperm.slane %v1169_v63, %v2947_v45  ;;  %v1117_v4 = vperm.slane %v1111_v0, %v2947_v45  ;;  %v1136_v5 = vrot.slane %v1121_v60, 4  ;;  %v1173_v8 = vperm.slane %v1167_v1, %v2947_v45 }
 0x1fd   : > { %v1138_v6 = vrot.slane %v1129_v61, 4  ;;  %v1141_v7 = vsel %vm586_vm1, 0.0, %v1140_v62  ;;  %v1185_v9 = vperm.slane %v1179_v3, %v2947_v45  ;;  %v1189_v10 = vperm.slane %v1181_v53, %v2947_v45 }
 0x1fe   : > { %v1192_v11 = vrot.slane %v1177_v2, 4  ;;  %v1134_v12 = vrot.slane %v1117_v4, 4  ;;  %v1137_v14 = vsel %vm586_vm1, 0.0, %v1136_v5  ;;  %v1214_v33 = vrot.slane %v1141_v7, 4 }
 0x1ff   : > { %v1139_v29 = vsel %vm586_vm1, 0.0, %v1138_v6  ;;  %v1190_v40 = vrot.slane %v1173_v8, 4  ;;  %v1194_v38 = vrot.slane %v1185_v9, 4  ;;  %v1196_v46 = vrot.slane %v1189_v10, 4 }
 0x200   : > { %v1193_v37 = vsel %vm586_vm1, 0.0, %v1192_v11  ;;  %v1203_v15 = vrot.slane %v1137_v14, 4  ;;  %v1135_v42 = vsel %vm586_vm1, 0.0, %v1134_v12  ;;  %v1198_v49 = vsel %vm586_vm1, %v1136_v5, %v1117_v4 }
 0x201   : > { %v1257_v16 = vrot.slane %v1193_v37, 4  ;;  %v1195_v51 = vsel %vm586_vm1, 0.0, %v1194_v38  ;;  %v1197_v13 = vsel %vm586_vm1, 0.0, %v1196_v46  ;;  %v1191_v48 = vsel %vm586_vm1, 0.0, %v1190_v40 }
 0x202   : > { %v1202_v50 = vperm.slane %v1198_v49, %v2935_v27  ;;  %v1268_v52 = vrot.slane %v1197_v13, 4  ;;  %v1204_v17 = vsel %vm586_vm1, %v1203_v15, %v1135_v42  ;;  %v1209_v18 = vsel %vm586_vm1, %v1140_v62, %v1129_v61 }
 0x203   : > { %v1215_v19 = vsel %vm586_vm1, %v1214_v33, %v1139_v29  ;;  %v1208_v20 = vperm.slane %v1204_v17, %v2935_v27  ;;  %v1213_v21 = vperm.slane %v1209_v18, %v2935_v27  ;;  %v1252_v25 = vsel %vm586_vm1, %v1192_v11, %v1173_v8 }
 0x204   : > { %v1219_v23 = vperm.slane %v1215_v19, %v2935_v27  ;;  %v1222_v24 = vrot.slane %v1202_v50, 4  ;;  %v1258_v26 = vsel %vm586_vm1, %v1257_v16, %v1191_v48  ;;  %v1263_v28 = vsel %vm586_vm1, %v1196_v46, %v1185_v9 }
 0x205   : > { %v1269_v22 = vsel %vm586_vm1, %v1268_v52, %v1195_v51  ;;  %v1220_v30 = vrot.slane %v1208_v20, 4  ;;  %v1234_v34 = vrot.slane %v1213_v21, 4  ;;  %v1256_v58 = vperm.slane %v1252_v25, %v2935_v27 }
 0x206   : > { %v1232_v32 = vrot.slane %v1219_v23, 4  ;;  %v1262_v35 = vperm.slane %v1258_v26, %v2935_v27  ;;  %v1267_v57 = vperm.slane %v1263_v28, %v2935_v27  ;;  %v1273_v36 = vperm.slane %v1269_v22, %v2935_v27 }
 0x207   : > { %v1223_v39 = vsel %vm586_vm1, %v1208_v20, %v1222_v24  ;;  %v1221_v41 = vsel %vm586_vm1, %v1220_v30, %v1202_v50  ;;  %v1276_v44 = vrot.slane %v1256_v58, 4  ;;  %v1235_v59 = vsel %vm586_vm1, %v1219_v23, %v1234_v34 }
 0x208   : > { %v1233_v43 = vsel %vm586_vm1, %v1232_v32, %v1213_v21  ;;  %v1231_v31 = vperm.slane %v1223_v39, %v2947_v45  ;;  %v1227_v47 = vperm.slane %v1221_v41, %v2947_v45  ;;  %v1274_v54 = vrot.slane %v1262_v35, 4 }
 0x209   : > { %v1239_v53 = vperm.slane %v1233_v43, %v2947_v45  ;;  %v1286_v55 = vrot.slane %v1273_v36, 4  ;;  %v1288_v56 = vrot.slane %v1267_v57, 4  ;;  %v1277_v27 = vsel %vm586_vm1, %v1262_v35, %v1276_v44 }
 0x20a   : > { %v1250_v60 = vrot.slane %v1231_v31, 4  ;;  %v1275_v62 = vsel %vm586_vm1, %v1274_v54, %v1256_v58  ;;  %v1246_v0 = vrot.slane %v1227_v47, 4  ;;  %v1243_v3 = vperm.slane %v1235_v59, %v2947_v45 }
 0x20b   : > { %v1244_v61 = vrot.slane %v1239_v53, 4  ;;  %v1287_v63 = vsel %vm586_vm1, %v1286_v55, %v1267_v57  ;;  %v1281_v1 = vperm.slane %v1275_v62, %v2947_v45  ;;  %v1285_v4 = vperm.slane %v1277_v27, %v2947_v45 }
 0x20c   : > { %v1293_v2 = vperm.slane %v1287_v63, %v2947_v45  ;;  %v1247_v6 = vsel %vm586_vm1, %v1239_v53, %v1246_v0  ;;  %v1289_v7 = vsel %vm586_vm1, %v1273_v36, %v1288_v56  ;;  %v1248_v12 = vrot.slane %v1243_v3, 4 }
 0x20d   : > { %v1245_v5 = vsel %vm586_vm1, %v1244_v61, %v1227_v47  ;;  %v1300_v10 = vrot.slane %v1281_v1, 4  ;;  %v1308_v11 = vpack.c.bf16 %v1247_v6, %v1247_v6  ;;  %v1297_v14 = vperm.slane %v1289_v7, %v2947_v45 }
 0x20e   : > { %v1298_v8 = vrot.slane %v1293_v2, 4  ;;  %v1306_v9 = vpack.c.bf16 %v1245_v5, %v1245_v5  ;;  %v1251_v29 = vsel %vm586_vm1, %v1243_v3, %v1250_v60  ;;  %v1304_v33 = vrot.slane %v1285_v4, 4 }
 0x20f   : > { %v1301_v38 = vsel %vm586_vm1, %v1293_v2, %v1300_v10  ;;  %v1559_v46 = vunpack.c.l.b16 %v1308_v11  ;;  %v1249_v42 = vsel %vm586_vm1, %v1248_v12, %v1231_v31  ;;  %v1302_v49 = vrot.slane %v1297_v14, 4 }
 0x210   : > { %v1299_v40 = vsel %vm586_vm1, %v1298_v8, %v1281_v1  ;;  %v1531_v37 = vunpack.c.l.b16 %v1306_v9  ;;  %v1309_v16 = vpack.c.bf16 %v1301_v38, %v1301_v38  ;;  %v1310_v51 = vpack.c.bf16 %v1249_v42, %v1249_v42 }
 0x211   : > { %v1307_v15 = vpack.c.bf16 %v1299_v40, %v1299_v40  ;;  %v1305_v13 = vsel %vm586_vm1, %v1297_v14, %v1304_v33  ;;  %v1312_v48 = vpack.c.bf16 %v1251_v29, %v1251_v29  ;;  %v1303_v52 = vsel %vm586_vm1, %v1302_v49, %v1285_v4 }
 0x212   : > { %v1560_v45 = vunpack.c.l.b16 %v1309_v16  ;;  %v1313_v17 = vpack.c.bf16 %v1305_v13, %v1305_v13  ;;  %v1311_v18 = vpack.c.bf16 %v1303_v52, %v1303_v52  ;;  %v1587_v19 = vunpack.c.l.b16 %v1310_v51 }
 0x213   : > { %v1532_v50 = vunpack.c.l.b16 %v1307_v15  ;;  %v1615_v20 = vunpack.c.l.b16 %v1312_v48 }
 0x214   : > { %v1561_v23 = vpack.c.b16 %v1560_v45, %v1559_v46  ;;  %v1616_v24 = vunpack.c.l.b16 %v1313_v17  ;;  %v1588_v25 = vunpack.c.l.b16 %v1311_v18 }
 0x215   : > { %v1533_v21 = vpack.c.b16 %v1532_v50, %v1531_v37 }
 0x216   : > { %1573 = vmatpush.bf16.msrb.mxu3 %v1561_v23  ;;  %v1617_v26 = vpack.c.b16 %v1616_v24, %v1615_v20  ;;  %v1589_v28 = vpack.c.b16 %v1588_v25, %v1587_v19 }
 0x217   : > { %1545 = vmatpush.bf16.msrb.mxu2 %v1533_v21 }
 0x218   : > { %1629 = vmatpush.bf16.msra.mxu1 %v1617_v26  ;;  %1601 = vmatpush.bf16.msra.mxu0 %v1589_v28 }
 0x269   : > { %v1400_v35 = vpop.f32.mrf.mxu0 }
 0x26a   : > { %v1430_v58 = vpop.f32.mrf.mxu1  ;;  %v1448_v39 = vsel %vm1435_vm3, %v1400_v35, -inf }
 0x26b   : > { %v1454_v41 = vsel %vm1435_vm3, %v1430_v58, -inf }
 0x271   : > { %v1402_v53 = vpop.f32.mrf.mxu0 }
 0x272   : > { %v1432_v43 = vpop.f32.mrf.mxu1  ;;  %v1451_v54 = vsel %vm1435_vm3, %v1402_v53, -inf }
 0x273   : > { %v1340_v22 = vpop.f32.mrf.mxu2  ;;  %v1457_v47 = vsel %vm1435_vm3, %v1432_v43, -inf }
 0x274   : > { %v1370_v30 = vpop.f32.mrf.mxu3  ;;  %v1436_v32 = vsel %vm1435_vm3, %v1340_v22, -inf }
 0x275   : > { %1437 = vmax.xlane.f32.xlu1 %v1436_v32  ;;  %v1442_v34 = vsel %vm1435_vm3, %v1370_v30, -inf }
 0x276   : > { %1443 = vmax.xlane.f32.xlu0 %v1442_v34 }
 0x27b   : > { %v1342_v57 = vpop.f32.mrf.mxu2 }
 0x27c   : > { %v1439_v36 = vsel %vm1435_vm3, %v1342_v57, -inf  ;;  %v1372_v44 = vpop.f32.mrf.mxu3 }
 0x27d   : > { %1440 = vmax.xlane.f32.xlu2 %v1439_v36  ;;  %1449 = vmax.xlane.f32.xlu1 %v1448_v39  ;;  %v1445_v31 = vsel %vm1435_vm3, %v1372_v44, -inf }
 0x27e   : > { %1455 = vmax.xlane.f32.xlu0 %v1454_v41 }
 0x285   : > { %1446 = vmax.xlane.f32.xlu2 %v1445_v31  ;;  %1458 = vmax.xlane.f32.xlu1 %v1457_v47 }
 0x28d   : > { %1452 = vmax.xlane.f32.xlu2 %v1451_v54 }
 0x2e8   : > { %v1438_v55 = vpop.xlane.xlu1 %1437 }
 0x2e9   : > { %v1460_v56 = vsub.f32 %v1340_v22, %v1438_v55  ;;  %v1444_v59 = vpop.xlane.xlu0 %1443  ;;  %v1653_v55 = vld [vmem:[#allocation8 + $0x4] sm:$0xf] }
 0x2ea   : > { %v1462_v27 = vsub.f32 %v1370_v30, %v1444_v59  ;;  %v1655_v59 = vld [vmem:[#allocation8 + $0xc] sm:$0xf] }
 0x2eb   : > { %v1468_v60 = vmul.f32 1.442695, %v1460_v56  ;;  %v1691_v56 = vsel %vm1664_vm4, %v1653_v55, 0 }
 0x2ec   : > { %v1472_v61 = vmul.f32 1.442695, %v1462_v27  ;;  %1700 = vmatpush.bf16.msra.mxu3 %v1691_v56  ;;  %v1741_v27 = vsel %vm1664_vm4, %v1655_v59, 0  ;;  %v3272_v56 = vld [vmem:[%s3376_s9] sm:$0x7f] }
 0x2ed   : > { %2392 = vpow2.f32 %v1468_v60  ;;  %1750 = vmatpush.bf16.msrb.mxu1 %v1741_v27  ;;  %v1771_v59 = vperm.slane %v3272_v56, 1 }
 0x2ee   : > { %2394 = vpow2.f32 %v1472_v61  ;;  %v1654_v61 = vld [vmem:[#allocation8 + $0x8] sm:$0xf] }
 0x2f0   : > { %v1441_v62 = vpop.xlane.xlu2 %1440  ;;  %v1450_v63 = vpop.xlane.xlu1 %1449 }
 0x2f1   : > { %v1461_v0 = vsub.f32 %v1342_v57, %v1441_v62  ;;  %v1456_v1 = vpop.xlane.xlu0 %1455  ;;  %v1464_v5 = vsub.f32 %v1400_v35, %v1450_v63  ;;  %v1716_v63 = vsel %vm1664_vm4, %v1654_v61, 0 }
 0x2f2   : > { %v1466_v2 = vsub.f32 %v1430_v58, %v1456_v1  ;;  %1725 = vmatpush.bf16.msrb.mxu0 %v1716_v63 }
 0x2f3   : > { %v2393_v3 = vpop.eup %2392  ;;  %v1470_v4 = vmul.f32 1.442695, %v1461_v0  ;;  %v1476_v10 = vmul.f32 1.442695, %v1464_v5 }
 0x2f4   : > { %v2395_v6 = vpop.eup %2394  ;;  %v1484_v7 = vsel %vm1435_vm3, %v2393_v3, 0.0  ;;  %v1480_v9 = vmul.f32 1.442695, %v1466_v2  ;;  %v1516_v33 = vpack.c.bf16 %v2393_v3, %v2393_v3 }
 0x2f5   : > { %2396 = vpow2.f32 %v1470_v4  ;;  %1485 = vadd.xlane.f32.xlu2 %v1484_v7  ;;  %v1490_v8 = vsel %vm1435_vm3, %v2395_v6, 0.0  ;;  %v1518_v45 = vpack.c.bf16 %v2395_v6, %v2395_v6 }
 0x2f6   : > { %1491 = vadd.xlane.f32.xlu1 %v1490_v8  ;;  %2398 = vpow2.f32 %v1480_v9  ;;  %v1526_v16 = vunpack.c.l.b16 %v1516_v33 }
 0x2f7   : > { %2400 = vpow2.f32 %v1476_v10  ;;  %v1554_v25 = vunpack.c.l.b16 %v1518_v45 }
 0x2f8   : > { %v1447_v11 = vpop.xlane.xlu2 %1446  ;;  %v1459_v12 = vpop.xlane.xlu1 %1458 }
 0x2f9   : > { %v1463_v14 = vsub.f32 %v1372_v44, %v1447_v11  ;;  %v1467_v29 = vsub.f32 %v1432_v43, %v1459_v12 }
 0x2fb   : > { %v2397_v40 = vpop.eup %2396  ;;  %v1474_v37 = vmul.f32 1.442695, %v1463_v14  ;;  %v1482_v38 = vmul.f32 1.442695, %v1467_v29 }
 0x2fc   : > { %v1517_v46 = vpack.c.bf16 %v2397_v40, %v2397_v40  ;;  %v1487_v15 = vsel %vm1435_vm3, %v2397_v40, 0.0  ;;  %v2399_v49 = vpop.eup %2398 }
 0x2fd   : > { %2402 = vpow2.f32 %v1474_v37  ;;  %1488 = vadd.xlane.f32.xlu0 %v1487_v15  ;;  %v2401_v48 = vpop.eup %2400  ;;  %v1522_v17 = vpack.c.bf16 %v2399_v49, %v2399_v49  ;;  %v1502_v36 = vsel %vm1435_vm3, %v2399_v49, 0.0 }
 0x2fe   : > { %v1527_v42 = vunpack.c.l.b16 %v1517_v46  ;;  %2404 = vpow2.f32 %v1482_v38  ;;  %v1496_v23 = vsel %vm1435_vm3, %v2401_v48, 0.0  ;;  %v1520_v34 = vpack.c.bf16 %v2401_v48, %v2401_v48 }
 0x2ff   : > { %v1610_v28 = vunpack.c.l.b16 %v1522_v17 }
 0x300   : > { %v1453_v51 = vpop.xlane.xlu2 %1452  ;;  %v1528_v13 = vpack.c.b16 %v1527_v42, %v1526_v16  ;;  %v1582_v41 = vunpack.c.l.b16 %v1520_v34 }
 0x301   : > { %v1465_v50 = vsub.f32 %v1402_v53, %v1453_v51  ;;  %v1652_v53 = vld [vmem:[#allocation8] sm:$0xf] }
 0x302   : > { %2179 = vmatmul.msk.bf16.vlgmr.msrb.gmra.mxu2 %vm1435_vm3, %v1528_v13  ;;  %v1666_v54 = vsel %vm1664_vm4, %v1652_v53, 0 }
 0x303   : > { %v2403_v52 = vpop.eup %2402  ;;  %v1478_v18 = vmul.f32 1.442695, %v1465_v50  ;;  %1675 = vmatpush.bf16.msra.mxu2 %v1666_v54 }
 0x304   : > { %v2405_v19 = vpop.eup %2404  ;;  %v1519_v20 = vpack.c.bf16 %v2403_v52, %v2403_v52  ;;  %v1493_v21 = vsel %vm1435_vm3, %v2403_v52, 0.0 }
 0x305   : > { %v1523_v24 = vpack.c.bf16 %v2405_v19, %v2405_v19  ;;  %2406 = vpow2.f32 %v1478_v18  ;;  %1494 = vadd.xlane.f32.xlu2 %v1493_v21  ;;  %1497 = vadd.xlane.f32.xlu0 %v1496_v23  ;;  %v1505_v39 = vsel %vm1435_vm3, %v2405_v19, 0.0 }
 0x306   : > { %v1555_v26 = vunpack.c.l.b16 %v1519_v20 }
 0x307   : > { %v1611_v22 = vunpack.c.l.b16 %v1523_v24 }
 0x308   : > { %v1556_v30 = vpack.c.b16 %v1555_v26, %v1554_v25 }
 0x309   : > { %v1612_v32 = vpack.c.b16 %v1611_v22, %v1610_v28 }
 0x30a   : > { %2180 = vmatmul.msk.bf16.vlgmr.msrb.gmra.mxu3 %vm1435_vm3, %v1556_v30 }
 0x30b   : > { %v2407_v58 = vpop.eup %2406  ;;  %2182 = vmatmul.msk.bf16.vlgmr.msra.gmra.mxu1 %vm1435_vm3, %v1612_v32 }
 0x30c   : > { %v1521_v35 = vpack.c.bf16 %v2407_v58, %v2407_v58  ;;  %v1499_v57 = vsel %vm1435_vm3, %v2407_v58, 0.0 }
 0x30d   : > { %1500 = vadd.xlane.f32.xlu1 %v1499_v57  ;;  %1503 = vadd.xlane.f32.xlu2 %v1502_v36 }
 0x30e   : > { %v1583_v43 = vunpack.c.l.b16 %v1521_v35  ;;  %1506 = vadd.xlane.f32.xlu0 %v1505_v39 }
 0x310   : > { %v1584_v44 = vpack.c.b16 %v1583_v43, %v1582_v41 }
 0x312   : > { %2181 = vmatmul.msk.bf16.vlgmr.msra.gmra.mxu0 %vm1435_vm3, %v1584_v44 }
 0x368   : > { %v1486_v31 = vpop.xlane.xlu2 %1485 }
 0x369   : > { %2408 = vrcp.f32 %v1486_v31  ;;  %v1492_v2 = vpop.xlane.xlu1 %1491 }
 0x36f   : > { %v2409_v5 = vpop.eup %2408 }
 0x370   : > { %v1489_v47 = vpop.xlane.xlu0 %1488 }
 0x378   : > { %v1495_v60 = vpop.xlane.xlu2 %1494  ;;  %v1498_v62 = vpop.xlane.xlu0 %1497 }
 0x380   : > { %v1504_v0 = vpop.xlane.xlu2 %1503  ;;  %v1501_v12 = vpop.xlane.xlu1 %1500 }
 0x381   : > { %2410 = vrcp.f32 %v1504_v0  ;;  %v1507_v3 = vpop.xlane.xlu0 %1506 }
 0x382   : > { %2412 = vrcp.f32 %v1489_v47 }
 0x383   : > { %2414 = vrcp.f32 %v1507_v3 }
 0x384   : > { %2416 = vrcp.f32 %v1492_v2 }
 0x385   : > { %v1547_v1 = vpop.f32.mrf.mxu2  ;;  %2418 = vrcp.f32 %v1498_v62 }
 0x386   : > { %v1636_v7 = vmul.f32 %v2409_v5, %v1547_v1  ;;  %2420 = vrcp.f32 %v1495_v60  ;;  %v2435_v5 = vld [vmem:[%s2919_s24] sm:$0xff] }
 0x387   : > { %v2411_v6 = vpop.eup %2410  ;;  %2422 = vrcp.f32 %v1501_v12 }
 0x388   : > { %v1631_v4 = vpop.f32.mrf.mxu1  ;;  %v2413_v8 = vpop.eup %2412  ;;  %v1644_v14 = vpack.c.bf16 %v1636_v7, %v1636_v7 }
 0x389   : > { %v1642_v9 = vmul.f32 %v2411_v6, %v1631_v4  ;;  %v2415_v40 = vpop.eup %2414 }
 0x38a   : > { %v2417_v46 = vpop.eup %2416  ;;  %v1658_v42 = vunpack.c.l.b16 %v1644_v14 }
 0x38b   : > { %v1650_v15 = vpack.c.bf16 %v1642_v9, %v1642_v9  ;;  %v2419_v13 = vpop.eup %2418 }
 0x38c   : > { %v2421_v52 = vpop.eup %2420 }
 0x38d   : > { %v1549_v10 = vpop.f32.mrf.mxu2  ;;  %v1575_v11 = vpop.f32.mrf.mxu3  ;;  %v1734_v17 = vunpack.c.l.b16 %v1650_v15  ;;  %v2712_v15 = vmov 32.0  }
 0x38e   : > { %v1637_v29 = vmul.f32 %v2413_v8, %v1549_v10  ;;  %v1638_v51 = vmul.f32 %v2417_v46, %v1575_v11  ;;  %v2423_v23 = vpop.eup %2422  ;;  %2424 = vrcp.f32 %v2712_v15 }
 0x38f   : > { %v1603_v33 = vpop.f32.mrf.mxu0 }
 0x390   : > { %v1645_v37 = vpack.c.bf16 %v1637_v29, %v1637_v29  ;;  %v1633_v38 = vpop.f32.mrf.mxu1  ;;  %v1640_v45 = vmul.f32 %v2419_v13, %v1603_v33  ;;  %v1646_v20 = vpack.c.bf16 %v1638_v51, %v1638_v51  ;;  %v2436_v33 = vld [vmem:[%s2919_s24 + $0x8] sm:$0xff]  ;;  %s2631_s24 = sshra.s32 %s2003_s21, 4  ;;  %s2632_s24 = int_to_ptr.hbm [resolvable:$true] %s2631_s24 }
 0x391   : > { %v1643_v16 = vmul.f32 %v2415_v40, %v1633_v38  ;;  %s2633_s30 = scalar_lea.hbm %s2632_s24, 16  ;;  %p2638_p7 = scmp.lt.s32.totalorder %s2632_s24, %s3377_s10 }
 0x392   : > { %v1659_v49 = vunpack.c.l.b16 %v1645_v37  ;;  %v1648_v26 = vpack.c.bf16 %v1640_v45, %v1640_v45  ;;  %v1684_v30 = vunpack.c.l.b16 %v1646_v20  ;;  %p2634_p1 = scmp.ne.s32.totalorder %s2632_s24, %s2633_s30  ;;  %p2639_p8 = scmp.lt.s32.totalorder %s2637_s11, %s2633_s30 }
 0x393   : > { %v1651_v48 = vpack.c.bf16 %v1643_v16, %v1643_v16 }
 0x394   : > { %v1660_v50 = vpack.c.b16 %v1659_v49, %v1658_v42  ;;  %v1709_v58 = vunpack.c.l.b16 %v1648_v26  ;;  %v2425_v16 = vpop.eup %2424  ;;  %p2635_p4 = pnand %p2634_p1, %p2860_p0  ;;  %p2640_p9 = por %p2639_p8, %p2638_p7 }
 0x395   : > { %v1735_v18 = vunpack.c.l.b16 %v1651_v48  ;;  %v1577_v19 = vpop.f32.mrf.mxu3  ;;  %v1783_v42 = vmul.f32 32.0, %v2425_v16  ;;  %vm1787_vm5 = vweird.f32 %v2425_v16 }
 0x396   : > { %v1639_v21 = vmul.f32 %v2421_v52, %v1577_v19  ;;  %2183 = vmatmul.msk.bf16.vlgmr.msra.gmra.mxu2 %vm1324_vm2, %v1660_v50  ;;  %v2224_v19 = vld [vmem:[#allocation10 + $0x8] sm:$0xff]  ;;  %p2636_p13 = pneg %p2635_p4 }
 0x397   : > { %v1736_v24 = vpack.c.b16 %v1735_v18, %v1734_v17  ;;  %v1605_v25 = vpop.f32.mrf.mxu0  ;;  %v1784_v49 = vsub.f32 1.0, %v1783_v42  ;;  %1867 = vmatpush.bf16.msrb.mxu2 %v2224_v19 }
 0x398   : > { %v1647_v28 = vpack.c.bf16 %v1639_v21, %v1639_v21  ;;  %v1641_v22 = vmul.f32 %v2423_v23, %v1605_v25  ;;  %v2223_v21 = vld [vmem:[#allocation10] sm:$0xff]  ;;  %p2641_p10 = pnand %p2640_p9, %p2636_p13 }
 0x399   : > { %2186 = vmatmul.msk.bf16.vlgmr.msrb.gmra.mxu1 %vm1324_vm2, %v1736_v24  ;;  %v1785_v51 = vmul.f32 %v2425_v16, %v1784_v49 }
 0x39a   : > { %v1685_v32 = vunpack.c.l.b16 %v1647_v28  ;;  %v1649_v34 = vpack.c.bf16 %v1641_v22, %v1641_v22 }
 0x39b   : > { %v1786_v13 = vadd.f32 %v2425_v16, %v1785_v51  ;;  %1868 = vmatpush.bf16.msrb.mxu2 %v2223_v21 }
 0x39c   : > { %v1686_v35 = vpack.c.b16 %v1685_v32, %v1684_v30  ;;  %v1710_v57 = vunpack.c.l.b16 %v1649_v34  ;;  %v2228_v30 = vld [vmem:[%s3374_s7 + $0x18] sm:$0xff] }
 0x39d   : > { %v3296_v48 = vsel %vm1787_vm5, %v2425_v16, %v1786_v13  ;;  %1919 = vmatpush.bf16.msrb.mxu3 %v2228_v30 }
 0x39e   : > { %v1711_v36 = vpack.c.b16 %v1710_v57, %v1709_v58  ;;  %2184 = vmatmul.msk.bf16.vlgmr.msra.gmra.mxu3 %vm1324_vm2, %v1686_v35 }
 0x3a0   : > { %2185 = vmatmul.msk.bf16.vlgmr.msrb.gmra.mxu0 %vm1324_vm2, %v1711_v36 }
 0x416   : > { %v1752_v43 = vpop.f32.mrf.mxu1 }
 0x417   : > { %v1762_v27 = vsel %vm513_vm0, %v1752_v43, 0.0 }
 0x419   : > { %v1677_v39 = vpop.f32.mrf.mxu2 }
 0x41a   : > { %v1757_v31 = vsel %vm513_vm0, %v1677_v39, 0.0 }
 0x41d   : > { %v1727_v41 = vpop.f32.mrf.mxu0 }
 0x41e   : > { %v1760_v54 = vsel %vm513_vm0, %v1727_v41, 0.0  ;;  %v1754_v3 = vpop.f32.mrf.mxu1 }
 0x41f   : > { %v1769_v11 = vsel %vm513_vm0, %v1754_v3, 0.0 }
 0x421   : > { %v1702_v44 = vpop.f32.mrf.mxu3  ;;  %v1679_v60 = vpop.f32.mrf.mxu2 }
 0x422   : > { %v1758_v47 = vsel %vm513_vm0, %v1702_v44, 0.0  ;;  %v1764_v1 = vsel %vm513_vm0, %v1679_v60, 0.0 }
 0x423   : > { %v1759_v53 = vadd.f32 %v1758_v47, %v1757_v31 }
 0x425   : > { %v1761_v55 = vadd.f32 %v1760_v54, %v1759_v53  ;;  %v1729_v62 = vpop.f32.mrf.mxu0 }
 0x426   : > { %v1767_v7 = vsel %vm513_vm0, %v1729_v62, 0.0 }
 0x427   : > { %v1763_v61 = vadd.f32 %v1762_v27, %v1761_v55 }
 0x429   : > { %v1704_v63 = vpop.f32.mrf.mxu3  ;;  %v1772_v0 = vadd.f32 %v1771_v59, %v1763_v61 }
 0x42a   : > { %v1765_v2 = vsel %vm513_vm0, %v1704_v63, 0.0 }
 0x42b   : > { %v1766_v4 = vadd.f32 %v1765_v2, %v1764_v1  ;;  %v3279_v6 = vadd.f32 %v2435_v5, %v1772_v0  ;;  %v1834_v1 = vperm.slane %v3272_v56, 4 }
 0x42d   : > { %v1768_v8 = vadd.f32 %v1767_v7, %v1766_v4  ;;  %v1776_v9 = vsel %vm513_vm0, %v3279_v6, 0.0  ;;  %v1791_v10 = vmul.f32 %v3279_v6, %v3279_v6  ;;  %v2226_v7 = vld [vmem:[%s3374_s7 + $0x8] sm:$0xff] }
 0x42e   : > { %1777 = vadd.xlane.f32.xlu1 %v1776_v9 }
 0x42f   : > { %v1770_v12 = vadd.f32 %v1769_v11, %v1768_v8  ;;  %v1793_v14 = vsel %vm513_vm0, %v1791_v10, 0.0  ;;  %v2225_v8 = vld [vmem:[%s3374_s7] sm:$0xff]  ;;  %v2391_v10 = vld [vmem:[#allocation11] ss:$0 sm:$0xff] }
 0x430   : > { %1794 = vadd.xlane.f32.xlu0 %v1793_v14 }
 0x431   : > { %v1773_v29 = vadd.f32 %v1771_v59, %v1770_v12  ;;  %v1831_v59 = vperm.slane %v3272_v56, 3 }
 0x433   : > { %v3289_v40 = vadd.f32 %v2436_v33, %v1773_v29 }
 0x435   : > { %v1779_v37 = vsel %vm513_vm0, %v3289_v40, 0.0  ;;  %v1792_v38 = vmul.f32 %v3289_v40, %v3289_v40 }
 0x436   : > { %1780 = vadd.xlane.f32.xlu2 %v1779_v37  ;;  %v1886_v37 = vperm.slane %v3272_v56, 2 }
 0x437   : > { %v1796_v46 = vsel %vm513_vm0, %v1792_v38, 0.0 }
 0x438   : > { %1797 = vadd.xlane.f32.xlu1 %v1796_v46 }
 0x4a1   : > { %v1778_v50 = vpop.xlane.xlu1 %1777 }
 0x4a2   : > { %v1789_v45 = vmul.f32 %v3296_v48, %v1778_v50 }
 0x4a3   : > { %v1795_v52 = vpop.xlane.xlu0 %1794 }
 0x4a4   : > { %v1801_v17 = vmul.f32 %v1789_v45, %v1789_v45  ;;  %v1799_v18 = vmul.f32 %v1795_v52, %v3296_v48  ;;  %v1805_v54 = vsub.f32 %v3279_v6, %v1789_v45  ;;  %v2227_v6 = vld [vmem:[%s3374_s7 + $0x10] sm:$0xff] }
 0x4a5   : > { %1920 = vmatpush.bf16.msrb.mxu3 %v2227_v6 }
 0x4a6   : > { %v1803_v20 = vsub.f32 %v1799_v18, %v1801_v17 }
 0x4a8   : > { %v1807_v23 = vadd.f32 1e-05, %v1803_v20 }
 0x4a9   : > { %v1781_v24 = vpop.xlane.xlu2 %1780  ;;  %1921 = vmatpush.bf16.msrb.mxu3 %v2226_v7 }
 0x4aa   : > { %2426 = vrsqrt.f32 %v1807_v23  ;;  %v1790_v25 = vmul.f32 %v3296_v48, %v1781_v24  ;;  %vm1815_vm7 = vweird.f32 %v1807_v23 }
 0x4ab   : > { %v1798_v26 = vpop.xlane.xlu1 %1797 }
 0x4ac   : > { %v1802_v28 = vmul.f32 %v1790_v25, %v1790_v25  ;;  %v1800_v22 = vmul.f32 %v1798_v26, %v3296_v48  ;;  %v1806_v61 = vsub.f32 %v3289_v40, %v1790_v25 }
 0x4ad   : > { %1922 = vmatpush.bf16.msrb.mxu3 %v2225_v8 }
 0x4ae   : > { %v1804_v32 = vsub.f32 %v1800_v22, %v1802_v28 }
 0x4b0   : > { %v2427_v34 = vpop.eup %2426  ;;  %v1808_v58 = vadd.f32 1e-05, %v1804_v32 }
 0x4b1   : > { %v1810_v35 = vmul.f32 %v2427_v34, %v1807_v23  ;;  %vm1816_vm6 = vweird.f32 %v2427_v34 }
 0x4b2   : > { %2428 = vrsqrt.f32 %v1808_v58  ;;  %vm1817_vm8 = vmor %vm1815_vm7, %vm1816_vm6  ;;  %vm1825_vm10 = vweird.f32 %v1808_v58 }
 0x4b3   : > { %v1811_v57 = vmul.f32 %v2427_v34, %v1810_v35 }
 0x4b5   : > { %v1812_v36 = vmul.f32 0.5, %v1811_v57 }
 0x4b7   : > { %v1813_v39 = vsub.f32 1.5, %v1812_v36 }
 0x4b8   : > { %v2429_v41 = vpop.eup %2428 }
 0x4b9   : > { %v1814_v43 = vmul.f32 %v2427_v34, %v1813_v39  ;;  %v1820_v44 = vmul.f32 %v2429_v41, %v1808_v58  ;;  %vm1826_vm9 = vweird.f32 %v2429_v41 }
 0x4ba   : > { %vm1827_vm11 = vmor %vm1825_vm10, %vm1826_vm9 }
 0x4bb   : > { %v1821_v31 = vmul.f32 %v2429_v41, %v1820_v44  ;;  %v1818_v47 = vsel %vm1817_vm8, %v2427_v34, %v1814_v43 }
 0x4bc   : > { %v1829_v27 = vmul.f32 %v1818_v47, %v1805_v54 }
 0x4bd   : > { %v1822_v53 = vmul.f32 0.5, %v1821_v31 }
 0x4be   : > { %v1832_v63 = vmul.f32 %v1831_v59, %v1829_v27 }
 0x4bf   : > { %v1823_v55 = vsub.f32 1.5, %v1822_v53  ;;  %v1979_v53 = vperm.slane %v3272_v56, 5 }
 0x4c0   : > { %v1835_v3 = vadd.f32 %v1834_v1, %v1832_v63 }
 0x4c1   : > { %v1824_v60 = vmul.f32 %v2429_v41, %v1823_v55  ;;  %v1982_v55 = vperm.slane %v3272_v56, 6 }
 0x4c3   : > { %v1828_v62 = vsel %vm1827_vm11, %v2429_v41, %v1824_v60 }
 0x4c4   : > { %v1830_v0 = vmul.f32 %v1828_v62, %v1806_v61 }
 0x4c6   : > { %v1833_v2 = vmul.f32 %v1831_v59, %v1830_v0 }
 0x4c8   : > { %v1836_v4 = vadd.f32 %v1834_v1, %v1833_v2 }
 0x4ca   : > { %v1837_v5 = vpack.c.bf16 %v1836_v4, %v1835_v3 }
 0x4cc   : > { %2195 = vmatmul.msk.bf16.vlgmr.msrb.gmra.mxu2 %vm513_vm0, %v1837_v5 }
 0x54f   : > { %v1870_v9 = vpop.f32.mrf.mxu2 }
 0x550   : > { %v1871_v11 = vadd.f32 %v2391_v10, %v1870_v9 }
 0x552   : > { %v1875_v29 = vmax.f32 %v1871_v11, 0.0 }
 0x557   : > { %v1872_v12 = vpop.f32.mrf.mxu2 }
 0x558   : > { %v1873_v14 = vadd.f32 %v2391_v10, %v1872_v12 }
 0x55a   : > { %v1876_v33 = vmax.f32 %v1873_v14, 0.0 }
 0x55c   : > { %v1877_v40 = vpack.c.bf16 %v1876_v33, %v1875_v29 }
 0x55e   : > { %2212 = vmatmul.msk.bf16.vlgmr.msrb.gmra.mxu3 %vm1911_vm12, %v1877_v40 }
 0x5e1   : > { %v1924_v38 = vpop.f32.mrf.mxu3 }
 0x5e2   : > { %v1925_v46 = vadd.f32 %v1924_v38, %v1886_v37 }
 0x5e4   : > { %v1929_v15 = vadd.f32 %v1925_v46, %v1835_v3 }
 0x5e6   : > { %v1931_v16 = vsel %vm513_vm0, %v1929_v15, 0.0  ;;  %v1939_v42 = vmul.f32 %v1929_v15, %v1929_v15 }
 0x5e7   : > { %1932 = vadd.xlane.f32.xlu2 %v1931_v16 }
 0x5e8   : > { %v1941_v49 = vsel %vm513_vm0, %v1939_v42, 0.0 }
 0x5e9   : > { %v1926_v51 = vpop.f32.mrf.mxu3  ;;  %1942 = vadd.xlane.f32.xlu1 %v1941_v49 }
 0x5ea   : > { %v1927_v13 = vadd.f32 %v1926_v51, %v1886_v37 }
 0x5ec   : > { %v1930_v50 = vadd.f32 %v1927_v13, %v1836_v4 }
 0x5ee   : > { %v1934_v45 = vsel %vm513_vm0, %v1930_v50, 0.0  ;;  %v1940_v52 = vmul.f32 %v1930_v50, %v1930_v50 }
 0x5ef   : > { %1935 = vadd.xlane.f32.xlu0 %v1934_v45 }
 0x5f0   : > { %v1944_v17 = vsel %vm513_vm0, %v1940_v52, 0.0 }
 0x5f1   : > { %1945 = vadd.xlane.f32.xlu2 %v1944_v17 }
 0x65a   : > { %v1933_v18 = vpop.xlane.xlu2 %1932 }
 0x65b   : > { %v1937_v19 = vmul.f32 %v1933_v18, %v3296_v48 }
 0x65c   : > { %v1943_v20 = vpop.xlane.xlu1 %1942 }
 0x65d   : > { %v1949_v21 = vmul.f32 %v1937_v19, %v1937_v19  ;;  %v1947_v23 = vmul.f32 %v1943_v20, %v3296_v48  ;;  %v1953_v47 = vsub.f32 %v1929_v15, %v1937_v19 }
 0x65f   : > { %v1951_v24 = vsub.f32 %v1947_v23, %v1949_v21 }
 0x661   : > { %v1955_v25 = vadd.f32 1e-05, %v1951_v24 }
 0x662   : > { %v1936_v26 = vpop.xlane.xlu0 %1935 }
 0x663   : > { %2430 = vrsqrt.f32 %v1955_v25  ;;  %v1938_v28 = vmul.f32 %v1936_v26, %v3296_v48  ;;  %vm1963_vm14 = vweird.f32 %v1955_v25 }
 0x664   : > { %v1946_v22 = vpop.xlane.xlu2 %1945 }
 0x665   : > { %v1950_v30 = vmul.f32 %v1938_v28, %v1938_v28  ;;  %v1948_v32 = vmul.f32 %v1946_v22, %v3296_v48  ;;  %v1954_v0 = vsub.f32 %v1930_v50, %v1938_v28 }
 0x667   : > { %v1952_v34 = vsub.f32 %v1948_v32, %v1950_v30 }
 0x669   : > { %v2431_v58 = vpop.eup %2430  ;;  %v1956_v35 = vadd.f32 1e-05, %v1952_v34 }
 0x66a   : > { %v1958_v57 = vmul.f32 %v2431_v58, %v1955_v25  ;;  %vm1964_vm13 = vweird.f32 %v2431_v58 }
 0x66b   : > { %2432 = vrsqrt.f32 %v1956_v35  ;;  %vm1965_vm15 = vmor %vm1963_vm14, %vm1964_vm13  ;;  %vm1973_vm2 = vweird.f32 %v1956_v35 }
 0x66c   : > { %v1959_v36 = vmul.f32 %v2431_v58, %v1958_v57 }
 0x66e   : > { %v1960_v39 = vmul.f32 0.5, %v1959_v36 }
 0x670   : > { %v1961_v41 = vsub.f32 1.5, %v1960_v39 }
 0x671   : > { %v2433_v43 = vpop.eup %2432 }
 0x672   : > { %v1962_v44 = vmul.f32 %v2431_v58, %v1961_v41  ;;  %v1968_v31 = vmul.f32 %v2433_v43, %v1956_v35  ;;  %vm1974_vm1 = vweird.f32 %v2433_v43 }
 0x673   : > { %vm1975_vm3 = vmor %vm1973_vm2, %vm1974_vm1 }
 0x674   : > { %v1966_v48 = vsel %vm1965_vm15, %v2431_v58, %v1962_v44  ;;  %v1969_v54 = vmul.f32 %v2433_v43, %v1968_v31 }
 0x675   : > { %v1977_v59 = vmul.f32 %v1966_v48, %v1953_v47 }
 0x676   : > { %v1970_v27 = vmul.f32 0.5, %v1969_v54 }
 0x677   : > { %v1980_v60 = vmul.f32 %v1979_v53, %v1977_v59 }
 0x678   : > { %v1971_v61 = vsub.f32 1.5, %v1970_v27 }
 0x679   : > { %v1983_v62 = vadd.f32 %v1982_v55, %v1980_v60 }
 0x67a   : > { %v1972_v63 = vmul.f32 %v2433_v43, %v1971_v61 }
 0x67b   : > { %1985 = vst.msk [vmem:[%s474_s5] sm:$0xff] %vm513_vm0, %v1983_v62 }
 0x67c   : > { %v1976_v56 = vsel %vm1975_vm3, %v2433_v43, %v1972_v63 }
 0x67d   : > { %v1978_v1 = vmul.f32 %v1976_v56, %v1954_v0 }
 0x67f   : > { %v1981_v2 = vmul.f32 %v1979_v53, %v1978_v1 }
 0x681   : > { %v1984_v3 = vadd.f32 %v1982_v55, %v1981_v2 }
 0x683   : > { %1986 = vst.msk [vmem:[%s474_s5 + $0x8] sm:$0xff] %vm513_vm0, %v1984_v3 }
 0x684   : > { %2644 = shalt.err (!%p2641_p10)
}
 0x685   : > { %s2713_s28 = smov 128   ;;  %s2714_s19 = smov 8  }
 0x686   : > { %2252 = dma.vmem_to_hbm [thread:$0]  (%p2860_p0), %s2001_s20, 256, %s2003_s21, %s1988_s27, %s2713_s28, %s2713_s28, %s2714_s19  }
 0x687 PF: > { %s2017_s12 = sand.u32 1, %s2683_s13   ;;  %p3395_p11 = scmp.ge.s32.totalorder %s2695_s16, 2 }
 0x688   : > { %s2018_s8 = scalar_lea.sflag [#allocation4], %s2017_s12 }
 0x689   : > { %p2275_p12 = pnand %p3395_p11, %p2866_p6 }
 0x68b   : > { %p2276_p2 = pneg %p2275_p12 }
 0x68d   : > { %2678 = dma.done.wait (%p2276_p2), %s2018_s8, 256  }
 0x68e   : > { %2680 = vsyncadd (%p2276_p2), %s2018_s8, 4294967040  ;;  %p26_p5 = scmp.ge.s32.totalorder %s2836_s22, 4   ;;  %s3396_s13 = smov %s2687_s14 }
 0x68f   : > { %s3397_s14 = smov %s2691_s15  ;;  %s3398_s15 = smov %s2848_s17 }
 0x690   : > { %s3399_s16 = smov %s2836_s22  ;;  %28 = sbr.rel (!%p26_p5) target bundleno = 14 (0xe), region = 128 }
 0x695   :  { %2024 = vsyncpa [#allocation3], 1 }
 0x696   :  { %2026 = vsyncpa [#allocation3 + $0x1], 1 }
 0x697   :  { %2027 = vsyncpa [#allocation6], 1 }
 0x698   :  { %2028 = vsyncpa [#allocation9], 1 }
 0x699   :  { %2029 = vsyncpa [#allocation12], 1 }
 0x69a   :  { %2030 = vsyncpa [#allocation4], 1 }
 0x69b   :  { %2032 = vsyncpa [#allocation4 + $0x1], 1 }

</bundles_post_ra>
